<compile_context>
chip_gen: v6e
topology: v6e:2x2x1
jax: 0.10.0
libtpu: 0.0.40
codegen_flags: <defaults>
</compile_context>

<pallas_src>
import math

import jax
import jax.numpy as jnp
from jax.experimental import pallas as pl
from jax.experimental.pallas import tpu as pltpu


_MASK_VALUE = -1e30  # large finite negative (avoids -inf - -inf = NaN)


def _query_vmem_capacity_bytes():
    try:
        return int(pltpu.get_tpu_info().vmem_capacity_bytes)
    except Exception:
        return 64 * 1024 * 1024  # conservative (v7x-sized) fallback


_VMEM_CAP = _query_vmem_capacity_bytes()
# Leave ~25% of per-core VMEM for Mosaic-internal scratch:
#   v7x (64 MiB)  -> 48 MiB limit;  v5e/v6e (128 MiB) -> 96 MiB limit.
_VMEM_LIMIT = int(min(_VMEM_CAP - _VMEM_CAP // 4, 112 * 1024 * 1024))
_BIG_VMEM = _VMEM_CAP >= 100 * 1024 * 1024


def _pick_tile(dim, target, align):
    """Largest `align`-multiple divisor of `dim` that is <= target; else full dim."""
    if dim <= target:
        return dim
    t = (target // align) * align
    while t >= align:
        if dim % t == 0:
            return t
        t -= align
    return dim  # full dim is always a legal block


def _row_align(dtype):
    # bf16 packs two rows per sublane -> prefer 16-row alignment.
    return 16 if dtype == jnp.bfloat16 else 8


# ----------------------------------------------------------------------------
# Tiled linear: y = x @ w + b
# ----------------------------------------------------------------------------
def _linear_single_k_kernel(x_ref, w_ref, b_ref, o_ref):
    # Single K step: no f32 scratch round trip, write straight to the output tile.
    o_ref[...] = (
        jnp.dot(x_ref[...], w_ref[...], preferred_element_type=jnp.float32)
        + b_ref[...]
    ).astype(o_ref.dtype)


def _linear_acc_kernel(x_ref, w_ref, b_ref, o_ref, acc_ref):
    k = pl.program_id(2)

    @pl.when(k == 0)
    def _():
        acc_ref[...] = jnp.zeros_like(acc_ref)

    acc_ref[...] += jnp.dot(x_ref[...], w_ref[...],
                            preferred_element_type=jnp.float32)

    @pl.when(k == pl.num_programs(2) - 1)
    def _():
        o_ref[...] = (acc_ref[...] + b_ref[...]).astype(o_ref.dtype)


def linear(x2d, w, b, *, tm=None, tn=512, tk=512,
           operand_dtype=jnp.bfloat16, out_dtype=None):
    """y = x2d @ w + b  (w stored as (in, out), i.e. PyTorch weight.T)."""
    M, K = x2d.shape
    K2, N = w.shape
    assert K == K2
    if out_dtype is None:
        out_dtype = x2d.dtype
    if operand_dtype is not None:
        # Wrapper-side cast: halves HBM->VMEM DMA bytes, bf16 MXU fast path.
        x2d = x2d.astype(operand_dtype)
        w = w.astype(operand_dtype)
    b2 = b.astype(jnp.float32).reshape(1, N)

    if tm is None:
        tm = 1024 if _BIG_VMEM else 512  # bigger tiles on 128 MiB parts
    tm = _pick_tile(M, tm, _row_align(x2d.dtype))
    tn = _pick_tile(N, tn, 128)
    tk = _pick_tile(K, tk, 128)

    # Give megacore (v7x: 2 TensorCores) at least two parallel blocks if possible.
    if M // tm == 1 and N // tn == 1 and tm % (2 * _row_align(x2d.dtype)) == 0:
        tm //= 2

    nm, nn, nk = M // tm, N // tn, K // tk

    if nk == 1:
        return pl.pallas_call(
            _linear_single_k_kernel,
            out_shape=jax.ShapeDtypeStruct((M, N), out_dtype),
            grid=(nm, nn),
            in_specs=[
                pl.BlockSpec((tm, K), lambda i, j: (i, 0)),
                pl.BlockSpec((K, tn), lambda i, j: (0, j)),
                pl.BlockSpec((1, tn), lambda i, j: (0, j)),
            ],
            out_specs=pl.BlockSpec((tm, tn), lambda i, j: (i, j)),
            compiler_params=pltpu.CompilerParams(
                dimension_semantics=("parallel", "parallel"),
                vmem_limit_bytes=_VMEM_LIMIT,
            ),
        )(x2d, w, b2)

    return pl.pallas_call(
        _linear_acc_kernel,
        out_shape=jax.ShapeDtypeStruct((M, N), out_dtype),
        grid=(nm, nn, nk),
        in_specs=[
            pl.BlockSpec((tm, tk), lambda i, j, k: (i, k)),
            pl.BlockSpec((tk, tn), lambda i, j, k: (k, j)),
            pl.BlockSpec((1, tn), lambda i, j, k: (0, j)),
        ],
        out_specs=pl.BlockSpec((tm, tn), lambda i, j, k: (i, j)),
        scratch_shapes=[pltpu.VMEM((tm, tn), jnp.float32)],
        compiler_params=pltpu.CompilerParams(
            dimension_semantics=("parallel", "parallel", "arbitrary"),
            vmem_limit_bytes=_VMEM_LIMIT,
        ),
    )(x2d, w, b2)


# ----------------------------------------------------------------------------
# Flash-style causal attention over (B*H, T, D)
# ----------------------------------------------------------------------------
def _flash_attention_kernel(q_ref, k_ref, v_ref, o_ref, m_ref, l_ref, acc_ref):
    qi = pl.program_id(1)
    kv = pl.program_id(2)
    tq, d = q_ref.shape[-2], q_ref.shape[-1]
    tkv = k_ref.shape[-2]
    scale = 1.0 / math.sqrt(d)

    @pl.when(kv == 0)
    def _():
        m_ref[...] = jnp.full_like(m_ref, _MASK_VALUE)
        l_ref[...] = jnp.zeros_like(l_ref)
        acc_ref[...] = jnp.zeros_like(acc_ref)

    def _scores():
        # Fold 1/sqrt(D) into q (T*D multiplies, not T*T); q stays in operand dtype.
        q = q_ref[...] * scale                            # (tq, D)
        # s = q @ k^T via dot_general (contract D vs D, no explicit transpose).
        return jax.lax.dot_general(
            q, k_ref[...], (((1,), (1,)), ((), ())),
            preferred_element_type=jnp.float32)           # (tq, tkv) f32

    def _online_update(s):
        v = v_ref[...]
        m_prev = m_ref[...]                               # (tq, 128), lanes equal
        s_max = jnp.max(s, axis=-1, keepdims=True)        # (tq, 1)
        m_next = jnp.maximum(m_prev, s_max)               # (tq, 128)
        alpha = jnp.exp(m_prev - m_next)                  # (tq, 128)
        p = jnp.exp(s - m_next[:, :1])                    # (tq, tkv)
        l_ref[...] = alpha * l_ref[...] + jnp.sum(p, axis=-1, keepdims=True)
        acc_ref[...] = alpha[:, :1] * acc_ref[...] + jnp.dot(
            p.astype(v.dtype), v, preferred_element_type=jnp.float32)
        m_ref[...] = m_next

    # Block classification w.r.t. the causal diagonal (fully-above blocks do
    # nothing; their DMA was already elided by the clamped kv index_map).
    below_diag = kv * tkv + (tkv - 1) <= qi * tq
    on_diag = jnp.logical_and(kv * tkv <= qi * tq + (tq - 1),
                              jnp.logical_not(below_diag))

    @pl.when(below_diag)
    def _():
        # Fully unmasked block: no iota/compare/select work at all.
        _online_update(_scores())

    @pl.when(on_diag)
    def _():
        s = _scores()
        row = qi * tq + jax.lax.broadcasted_iota(jnp.int32, (tq, tkv), 0)
        col = kv * tkv + jax.lax.broadcasted_iota(jnp.int32, (tq, tkv), 1)
        _online_update(jnp.where(col <= row, s, _MASK_VALUE))

    @pl.when(kv == pl.num_programs(2) - 1)
    def _():
        inv_l = pl.reciprocal(l_ref[...], approx=True)    # EUP slot
        o_ref[...] = (acc_ref[...] * inv_l[:, :1]).astype(o_ref.dtype)


def flash_attention(q, k, v, *, tq=256, tkv=256, operand_dtype=jnp.bfloat16):
    """q, k, v: (B*H, T, D) -> (B*H, T, D), causal."""
    BH, T, D = q.shape
    if operand_dtype is not None:
        q = q.astype(operand_dtype)
        k = k.astype(operand_dtype)
        v = v.astype(operand_dtype)
    align = _row_align(q.dtype)
    tq = _pick_tile(T, tq, align)
    tkv = _pick_tile(T, tkv, align)
    nq, nkv = T // tq, T // tkv

    def q_index(bh, qi, kv):
        return (bh, qi, 0)

    def kv_index(bh, qi, kv):
        # Clamp to the last KV block needed under the causal mask: fully-masked
        # blocks re-use the already-resident block, so no extra HBM DMA.
        last_needed = (qi * tq + (tq - 1)) // tkv
        return (bh, jnp.minimum(kv, last_needed), 0)

    return pl.pallas_call(
        _flash_attention_kernel,
        out_shape=jax.ShapeDtypeStruct((BH, T, D), q.dtype),
        grid=(BH, nq, nkv),
        in_specs=[
            pl.BlockSpec((pl.Squeezed(), tq, D), q_index),
            pl.BlockSpec((pl.Squeezed(), tkv, D), kv_index),
            pl.BlockSpec((pl.Squeezed(), tkv, D), kv_index),
        ],
        out_specs=pl.BlockSpec((pl.Squeezed(), tq, D), q_index),
        scratch_shapes=[
            pltpu.VMEM((tq, 128), jnp.float32),   # running max m (lane-aligned)
            pltpu.VMEM((tq, 128), jnp.float32),   # running denom l (lane-aligned)
            pltpu.VMEM((tq, D), jnp.float32),     # output accumulator
        ],
        compiler_params=pltpu.CompilerParams(
            dimension_semantics=("parallel", "parallel", "arbitrary"),
            vmem_limit_bytes=_VMEM_LIMIT,
        ),
    )(q, k, v)


# ----------------------------------------------------------------------------
# Fused head-merge + c_proj:  out[b,t,:] = sum_h y[b*H+h, t, :] @ w[h] + bias
# (reduces over the head axis directly from the flash layout -> no transpose)
# ----------------------------------------------------------------------------
def _head_proj_kernel(y_ref, w_ref, b_ref, o_ref, acc_ref):
    h = pl.program_id(3)

    @pl.when(h == 0)
    def _():
        acc_ref[...] = jnp.zeros_like(acc_ref)

    acc_ref[...] += jnp.dot(y_ref[...], w_ref[...],
                            preferred_element_type=jnp.float32)

    @pl.when(h == pl.num_programs(3) - 1)
    def _():
        o_ref[...] = (acc_ref[...] + b_ref[...]).astype(o_ref.dtype)


def head_merge_projection(y, w, b, *, batch, n_head, tm=256, tn=512,
                          operand_dtype=jnp.bfloat16, out_dtype=jnp.float32):
    """y: (B*H, T, D) flash output; w: (C, C) as (in, out); returns (B, T, C)."""
    BH, T, D = y.shape
    C_in, C_out = w.shape
    assert BH == batch * n_head and C_in == n_head * D
    if operand_dtype is not None:
        y = y.astype(operand_dtype)
        w = w.astype(operand_dtype)
    w3 = w.reshape(n_head, D, C_out)
    b2 = b.astype(jnp.float32).reshape(1, C_out)

    tm = _pick_tile(T, tm, _row_align(y.dtype))
    tn = _pick_tile(C_out, tn, 128)
    H = n_head

    return pl.pallas_call(
        _head_proj_kernel,
        out_shape=jax.ShapeDtypeStruct((batch, T, C_out), out_dtype),
        grid=(batch, T // tm, C_out // tn, H),
        in_specs=[
            pl.BlockSpec((pl.Squeezed(), tm, D),
                         lambda bi, ti, nj, h: (bi * H + h, ti, 0)),
            pl.BlockSpec((pl.Squeezed(), D, tn),
                         lambda bi, ti, nj, h: (h, 0, nj)),
            pl.BlockSpec((1, tn), lambda bi, ti, nj, h: (0, nj)),
        ],
        out_specs=pl.BlockSpec((pl.Squeezed(), tm, tn),
                               lambda bi, ti, nj, h: (bi, ti, nj)),
        scratch_shapes=[pltpu.VMEM((tm, tn), jnp.float32)],
        compiler_params=pltpu.CompilerParams(
            dimension_semantics=("parallel", "parallel", "parallel", "arbitrary"),
            vmem_limit_bytes=_VMEM_LIMIT,
        ),
    )(y, w3, b2)


# ----------------------------------------------------------------------------
# Module wrapper (glue in plain JAX: reshapes / q-k-v split)
# ----------------------------------------------------------------------------
def causal_self_attention(x, params, *, operand_dtype=jnp.bfloat16):
    B, T, C = x.shape
    H = params["n_head"]
    D = C // H
    qkv_dtype = operand_dtype if operand_dtype is not None else x.dtype

    # c_attn: (B*T, C) @ (C, 3C) + bias  (output kept in operand dtype so it
    # feeds the attention MXU without another cast / at half the HBM traffic).
    qkv = linear(x.reshape(B * T, C), params["w_attn"], params["b_attn"],
                 operand_dtype=operand_dtype, out_dtype=qkv_dtype)     # (B*T, 3C)

    # TODO(synk): the q/k/v head split remains an XLA-level transpose; folding it
    # into the flash BlockSpecs needs D % 128 == 0 (sub-128 lane slicing of the
    # fused qkv tensor violates the (8,128) tiling constraint at D=64).
    qkv = qkv.reshape(B, T, 3, H, D).transpose(2, 0, 3, 1, 4)          # (3,B,H,T,D)
    q = qkv[0].reshape(B * H, T, D)
    k = qkv[1].reshape(B * H, T, D)
    v = qkv[2].reshape(B * H, T, D)

    y = flash_attention(q, k, v, operand_dtype=operand_dtype)          # (B*H,T,D)

    # Fused head-merge + c_proj (eliminates the (B,H,T,D)->(B,T,H,D) transpose).
    out = head_merge_projection(y, params["w_proj"], params["b_proj"],
                                batch=B, n_head=H,
                                operand_dtype=operand_dtype, out_dtype=x.dtype)

    # TODO(synk): Dropout(0.3) is identity here (eval mode).
    return out                                                          # (B, T, C)


# ----------------------------------------------------------------------------
# Pure-JAX f32 reference (correctness check)
# ----------------------------------------------------------------------------
def reference(x, params):
    B, T, C = x.shape
    H = params["n_head"]
    D = C // H
    qkv = x @ params["w_attn"] + params["b_attn"]
    q, k, v = jnp.split(qkv, 3, axis=2)
    q = q.reshape(B, T, H, D).transpose(0, 2, 1, 3)
    k = k.reshape(B, T, H, D).transpose(0, 2, 1, 3)
    v = v.reshape(B, T, H, D).transpose(0, 2, 1, 3)
    s = jnp.einsum("bhqd,bhkd->bhqk", q, k) / math.sqrt(D)
    mask = jnp.tril(jnp.ones((T, T), dtype=bool))
    s = jnp.where(mask, s, -jnp.inf)
    p = jax.nn.softmax(s, axis=-1)
    y = jnp.einsum("bhqk,bhkd->bhqd", p, v)
    y = y.transpose(0, 2, 1, 3).reshape(B, T, C)
    return y @ params["w_proj"] + params["b_proj"]


def _make_params(key, C, H):
    k_wa, k_ba, k_wp, k_bp = jax.random.split(key, 4)
    bound = 1.0 / math.sqrt(C)  # PyTorch nn.Linear default init
    return {
        "n_head": H,
        # stored as (in, out) == PyTorch weight.T
        "w_attn": jax.random.uniform(k_wa, (C, 3 * C), jnp.float32, -bound, bound),
        "b_attn": jax.random.uniform(k_ba, (3 * C,), jnp.float32, -bound, bound),
        "w_proj": jax.random.uniform(k_wp, (C, C), jnp.float32, -bound, bound),
        "b_proj": jax.random.uniform(k_bp, (C,), jnp.float32, -bound, bound),
    }


# ----------------------------------------------------------------------------
# Main
# ----------------------------------------------------------------------------
if __name__ == "__main__":
    root = jax.random.PRNGKey(0)
    k1, k2, k3, k4, k5 = jax.random.split(root, 5)

    # --- Config 1: small GPT-ish shapes (single KV block per q block) --------
    B1, T1, C1, H1 = 2, 128, 256, 4
    params1 = _make_params(k1, C1, H1)
    x1 = jax.random.normal(k2, (B1, T1, C1), jnp.float32)
    ref1 = reference(x1, params1)

    # (a) exact f32-operand path, tight tolerance.
    out1_f32 = jax.block_until_ready(
        causal_self_attention(x1, params1, operand_dtype=None))
    assert out1_f32.shape == (B1, T1, C1)
    assert jnp.allclose(out1_f32, ref1, atol=2e-3, rtol=2e-3), "config 1 (f32) mismatch"

    # (b) default bf16-MXU-operand path (f32 accumulation), bf16-sized tolerance.
    out1 = jax.block_until_ready(causal_self_attention(x1, params1))
    assert jnp.allclose(out1, ref1, atol=2.5e-2, rtol=2.5e-2), "config 1 (bf16) mismatch"

    # --- Config 2: multi-KV-block online softmax + causal skip/mask gating ---
    B2, T2, C2, H2 = 1, 1024, 128, 2
    params2 = _make_params(k3, C2, H2)
    x2 = jax.random.normal(k4, (B2, T2, C2), jnp.float32)
    out2 = jax.block_until_ready(causal_self_attention(x2, params2))
    ref2 = reference(x2, params2)
    assert out2.shape == (B2, T2, C2)
    assert jnp.allclose(out2, ref2, atol=2.5e-2, rtol=2.5e-2), "config 2 mismatch"

    # --- Direct check of the tiled linear with a multi-step K reduction ------
    kx, kw, kb = jax.random.split(k5, 3)
    xl = jax.random.normal(kx, (128, 1024), jnp.float32)
    wl = jax.random.normal(kw, (1024, 256), jnp.float32) * 0.02
    bl = jax.random.normal(kb, (256,), jnp.float32)
    yl_ref = xl @ wl + bl
    yl_f32 = jax.block_until_ready(linear(xl, wl, bl, operand_dtype=None))
    assert jnp.allclose(yl_f32, yl_ref, atol=2e-3, rtol=2e-3), "linear (f32) mismatch"
    yl_bf16 = jax.block_until_ready(linear(xl, wl, bl))
    assert jnp.allclose(yl_bf16, yl_ref, atol=2e-2, rtol=2e-2), "linear (bf16) mismatch"

    print("KERNEL_OK")
</pallas_src>

<mosaic_0001>
module attributes {stable_mosaic.version = 11 : i64} {
  func.func @_linear_single_k_kernel(%arg0: i32, %arg1: i32, %arg2: memref<256x256xf32, #tpu.memory_space<vmem>>, %arg3: memref<256x384xf32, #tpu.memory_space<vmem>>, %arg4: memref<1x384xf32, #tpu.memory_space<vmem>>, %arg5: memref<256x384xf32, #tpu.memory_space<vmem>>) attributes {dimension_semantics = [#tpu.dimension_semantics<parallel>, #tpu.dimension_semantics<parallel>], iteration_bounds = array<i64: 1, 2>, scalar_prefetch = 0 : i64, scratch_operands = 0 : i64, tpu.core_type = #tpu.core_type<tc>, window_params = [{transform_indices = @transform_0, window_bounds = array<i64: 256, 256>}, {transform_indices = @transform_1, window_bounds = array<i64: 256, 384>}, {transform_indices = @transform_2, window_bounds = array<i64: 1, 384>}, {transform_indices = @transform_3, window_bounds = array<i64: 256, 384>}]} {
    %c0 = arith.constant 0 : index
    %c0_0 = arith.constant 0 : index
    %0 = vector.load %arg2[%c0, %c0_0] : memref<256x256xf32, #tpu.memory_space<vmem>>, vector<256x256xf32>
    %c0_1 = arith.constant 0 : index
    %c0_2 = arith.constant 0 : index
    %1 = vector.load %arg3[%c0_1, %c0_2] : memref<256x384xf32, #tpu.memory_space<vmem>>, vector<256x384xf32>
    %cst = arith.constant dense<0.000000e+00> : vector<256x384xf32>
    %2 = tpu.matmul %0, %1, %cst {dimension_numbers = #tpu.dot_dimension_numbers<[1], [0], [0], [1], [0, 0, 1, 1], [], []>} : vector<256x256xf32>, vector<256x384xf32>, vector<256x384xf32> -> vector<256x384xf32>
    %c0_3 = arith.constant 0 : index
    %c0_4 = arith.constant 0 : index
    %3 = vector.load %arg4[%c0_3, %c0_4] : memref<1x384xf32, #tpu.memory_space<vmem>>, vector<1x384xf32>
    %4 = vector.broadcast %3 : vector<1x384xf32> to vector<256x384xf32>
    %5 = arith.addf %2, %4 : vector<256x384xf32>
    %c0_5 = arith.constant 0 : index
    %c0_6 = arith.constant 0 : index
    %6 = vector.load %arg5[%c0_5, %c0_6] : memref<256x384xf32, #tpu.memory_space<vmem>>, vector<256x384xf32>
    tpu.vector_store %arg5[%c0_5, %c0_6], %5 {strides = array<i32>} : memref<256x384xf32, #tpu.memory_space<vmem>>, vector<256x384xf32>,
    return
  }
  func.func @transform_0(%arg0: i32, %arg1: i32) -> (i32, i32) {
    %c0_i32 = arith.constant 0 : i32
    %c0_i32_0 = arith.constant 0 : i32
    return %arg0, %c0_i32 : i32, i32
  }
  func.func @transform_1(%arg0: i32, %arg1: i32) -> (i32, i32) {
    %c0_i32 = arith.constant 0 : i32
    %c0_i32_0 = arith.constant 0 : i32
    return %c0_i32, %arg1 : i32, i32
  }
  func.func @transform_2(%arg0: i32, %arg1: i32) -> (i32, i32) {
    %c0_i32 = arith.constant 0 : i32
    %c0_i32_0 = arith.constant 0 : i32
    return %c0_i32, %arg1 : i32, i32
  }
  func.func @transform_3(%arg0: i32, %arg1: i32) -> (i32, i32) {
    %c0_i32 = arith.constant 0 : i32
    return %arg0, %arg1 : i32, i32
  }
}

</mosaic_0001>

<bundles_post_ra>
// kernel: tpu_custom_call.1
= control target key start
LH: loop header
LB: loop body
LE: loop exit
PB: predicated region body
PF: predicated region fallthrough
CT: control target
= control target key end

     0   :  { %8 = vsyncpa [#allocation3], 0  ;;  %s1999_s0 = inlined_call_operand.hbm [shape: f32[256,256], index: 0, kind: input, shape index: {}]   ;;  %s2000_s1 = inlined_call_operand.hbm [shape: f32[256,768], index: 1, kind: input, shape index: {}]   ;;  %s2001_s2 = inlined_call_operand.hbm [shape: f32[1,768], index: 2, kind: input, shape index: {}]   ;;  %s2002_s3 = inlined_call_operand.hbm [shape: f32[256,768], index: 3, kind: output, shape index: {}]  }
   0x1   :  { %9 = vsyncpa [#allocation6], 0 }
   0x2   :  { %11 = vsyncpa [#allocation6 + $0x1], 0 }
   0x3   :  { %12 = vsyncpa [#allocation4], 0 }
   0x4   :  { %14 = vsyncpa [#allocation4 + $0x1], 0  ;;  %s1464_s12 = smov 0   ;;  %s1466_s13 = smov 0  }
   0x5   :  { %s1468_s14 = smov 0   ;;  %s1470_s15 = smov 0  }
   0x6   :  { %s1472_s16 = smov 0   ;;  %s1474_s17 = smov 0  }
   0x7 LB: > { %s29_s18 = sadd.s32 1, %s1425_s16  ;;  %s65_s19 = sadd.s32 1, %s1417_s14  ;;  %s1429_s17 = sphi %s1474_s17, %s20_s17   ;;  %s1425_s16 = sphi %s1472_s16, %s2022_s16   ;;  %s1421_s15 = sphi %s1470_s15, %s2021_s15   ;;  %s1417_s14 = sphi %s1468_s14, %s2020_s14   ;;  %s1413_s13 = sphi %s1466_s13, %s2019_s13   ;;  %s1409_s12 = sphi %s1464_s12, %s2018_s12  }
   0x8   : > { %p30_p0 = scmp.ge.s32.totalorder %s29_s18, 2  ;;  %p72_p1 = scmp.ne.s32.totalorder %s1417_s14, %s1413_s13 }
   0x9   : > { %p73_p2 = scmp.eq.s32.totalorder %s1429_s17, 0  ;;  %p1202_p5 = scmp.lt.s32.totalorder %s1429_s17, 2 }
   0xa   : > { %s2024_s18 = smov (%p30_p0, %s29_s18), 0  ;;  %s173_s21 = sand.u32 1, %s1429_s17  }
   0xb   : > { %p74_p4 = por %p73_p2, %p72_p1  ;;  %s62_s20 = ssub.s32 %s1425_s16, %s2024_s18 }
   0xc   : > { %p63_p6 = scmp.eq.s32.totalorder %s62_s20, 0  ;;  %s175_s22 = sand.u32 1, %s1417_s14  }
   0xd   : > { %s1169_s23 = smul.u32 384, %s1425_s16  ;;  %p1519_p7 = pnand %p1202_p5, %p74_p4 }
   0xe   : > { %s1512_s24 = scalar_select %p63_p6, %s1417_s14, %s65_s19  }
   0xf   : > { %s1172_s25 = smul.u32 768, %s175_s22  ;;  %s183_s28 = scalar_lea.hbm %s2000_s1, %s1169_s23 }
  0x10   : > { %s1523_s5 = scalar_lea.sflag [#allocation6], %s173_s21  ;;  %p2004_p8 = pneg %p1519_p7 }
  0x11   : > { %s177_s30 = scalar_lea.vmem [#allocation5], %s1172_s25  ;;  %s1431_s7 = smov [#allocation5]  }
  0x12   : > { %s184_s4 = sshll.u32 %s177_s30, 4  ;;  %s1281_s8 = sshll.u32 %s1431_s7, 4  ;;  %s185_s4 = int_to_ptr.vmem [resolvable:$true] %s184_s4  ;;  %s1282_s8 = int_to_ptr.vmem [resolvable:$false] %s1281_s8 }
  0x13   : > { %s1276_s6 = scalar_lea.vmem %s185_s4, 12288  ;;  %s1283_s9 = scalar_lea.vmem %s1282_s8, 24576 }
  0x14   : > { %p1277_p9 = scmp.ne.s32.totalorder %s185_s4, %s1276_s6  ;;  %p1284_p12 = scmp.lt.s32.totalorder %s185_s4, %s1282_s8 }
  0x15   : > { %p1285_p13 = scmp.lt.s32.totalorder %s1283_s9, %s1276_s6 }
  0x16   : > { %p1279_p10 = pnand %p1277_p9, %p2004_p8 }
  0x17   : > { %p1286_p0 = por %p1285_p13, %p1284_p12 }
  0x18   : > { %p1280_p11 = pneg %p1279_p10 }
  0x1a   : > { %p1287_p2 = pnand %p1286_p0, %p1280_p11 }
  0x1c   : > { %1290 = shalt.err (!%p1287_p2)
}
  0x1d   : > { %s1432_s10 = smov 768   ;;  %s1433_s11 = smov 384  }
  0x1e   : > { %s1434_s19 = smov 24   ;;  %s1534_s20 = sadd.s32 4294967295, %s1429_s17  }
  0x1f   : > { %1193 = dma.hbm_to_vmem [thread:$0]  (!%p1519_p7), %s183_s28, 12288, %s185_s4, %s1523_s5, %s1432_s10, %s1433_s11, %s1434_s19  }
  0x20   : > { %s1158_s21 = sadd.s32 4294967294, %s1429_s17   ;;  %p78_p4 = scmp.ne.s32.totalorder %s1413_s13, %s1409_s12 }
  0x21   : > { %p2003_p5 = scmp.eq.s32.totalorder %s1534_s20, 0  ;;  %p130_p6 = scmp.eq.s32.totalorder %s1534_s20, 1 }
  0x22   : > { %p136_p9 = scmp.eq.s32.totalorder %s1158_s21, 1  ;;  %p1159_p11 = scmp.ge.s32.totalorder %s1429_s17, 1 }
  0x23   : > { %p1543_p10 = por %p2003_p5, %p78_p4  ;;  %p1551_p12 = por %p130_p6, %p72_p1 }
  0x24   : > { %p1555_p13 = por %p136_p9, %p78_p4  ;;  %p143_p0 = scmp.lt.s32.totalorder %s1429_s17, 3 }
  0x25   : > { %s2008_s25 = scalar_select %p1551_p12, 1, 0 }
  0x26   : > { %s2009_s26 = scalar_select %p1555_p13, 1, 0 }
  0x27   : > { %p1560_p2 = pnand %p1159_p11, %p143_p0  ;;  %s1435_s28 = smov [#allocation2]  }
  0x28   : > { %s159_s30 = sshll.u32 %s1435_s28, 4  ;;  %s1173_s4 = smul.u32 3, %s175_s22  ;;  %s160_s30 = int_to_ptr.vmem [resolvable:$true] %s159_s30 }
  0x29   : > { %p1186_p3 = pneg %p1560_p2  ;;  %s1170_s6 = smul.u32 48, %s1425_s16 }
  0x2a   : > { %s198_s11 = scalar_lea.vmem [#allocation7], %s1173_s4  ;;  %s1302_s21 = scalar_lea.vmem %s160_s30, 8192 }
  0x2b   : > { %p1571_p1 = pnand %p1186_p3, %p2003_p5  ;;  %s1578_s10 = scalar_lea.hbm %s2001_s2, %s1170_s6 }
  0x2c   : > { %s206_s19 = sshll.u32 %s198_s11, 4  ;;  %p1303_p6 = scmp.ne.s32.totalorder %s160_s30, %s1302_s21  ;;  %s207_s19 = int_to_ptr.vmem [resolvable:$true] %s206_s19 }
  0x2d   : > { %p1293_p4 = pneg %p1571_p1  ;;  %p1310_p0 = scmp.lt.s32.totalorder %s160_s30, %s160_s30 }
  0x2e   : > { %p1311_p3 = scmp.lt.s32.totalorder %s1302_s21, %s1302_s21 }
  0x2f   : > { %p1305_p9 = pnand %p1303_p6, %p1293_p4 }
  0x30   : > { %p1312_p5 = por %p1311_p3, %p1310_p0 }
  0x31   : > { %p1306_p11 = pneg %p1305_p9 }
  0x33   : > { %p1313_p8 = pnand %p1312_p5, %p1306_p11 }
  0x35   : > { %1316 = shalt.err (!%p1313_p8)
}
  0x36   : > { %s1436_s22 = smov 256   ;;  %s1437_s28 = smov 16  }
  0x37   : > { %1189 = dma.hbm_to_vmem [thread:$0]  (!%p1571_p1), %s1999_s0, 8192, %s160_s30, [#allocation3], %s1436_s22, %s1436_s22, %s1437_s28  }
  0x38   : > { %s1330_s8 = scalar_lea.vmem %s207_s19, 48  ;;  %p2012_p12 = pneg %p1519_p7 }
  0x39   : > { %p1331_p13 = scmp.ne.s32.totalorder %s207_s19, %s1330_s8  ;;  %s1438_s9 = smov [#allocation7]  }
  0x3a   : > { %s1335_s11 = sshll.u32 %s1438_s9, 4  ;;  %s1336_s11 = int_to_ptr.vmem [resolvable:$false] %s1335_s11 }
  0x3b   : > { %p1333_p4 = pnand %p1331_p13, %p2012_p12  ;;  %s1337_s21 = scalar_lea.vmem %s1336_s11, 96 }
  0x3c   : > { %p1338_p8 = scmp.lt.s32.totalorder %s207_s19, %s1336_s11  ;;  %p1339_p5 = scmp.lt.s32.totalorder %s1337_s21, %s1330_s8 }
  0x3d   : > { %p1334_p6 = pneg %p1333_p4 }
  0x3e   : > { %p1340_p9 = por %p1339_p5, %p1338_p8 }
  0x40   : > { %p1341_p11 = pnand %p1340_p9, %p1334_p6 }
  0x42   : > { %1344 = shalt.err (!%p1341_p11)
}
  0x43   : > { %1196 = dma.hbm_to_vmem [thread:$0]  (!%p1519_p7), %s1578_s10, 48, %s207_s19, %s1523_s5  }
  0x44   : > { %215 = sbr.rel (%p1560_p2) target bundleno = 481 (0x1e1), region = 32  ;;  %p2013_p12 = scmp.eq.s32.totalorder (!%p1560_p2), %s1534_s20, 0 }
  0x49   : > { %1396 = dma.done.wait (%p2013_p12), [#allocation3], 8192   ;;  %p2014_p13 = pmov %p2013_p12 }
  0x4a   : > { %s221_s30 = sand.u32 1, %s1534_s20   ;;  %s1602_s7 = sand.u32 1, %s1413_s13  }
  0x4b   : > { %1398 = vsyncadd (%p2014_p13), [#allocation3], 4294959104  ;;  %s1174_s29 = smul.u32 768, %s1602_s7  ;;  %s222_s22 = scalar_lea.sflag [#allocation6], %s221_s30 }
  0x4d   : > { %s1607_s5 = scalar_lea.vmem [#allocation5], %s1174_s29 }
  0x4e   : > { %1400 = dma.done.wait (%p1543_p10), %s222_s22, 12336  }
  0x4f   : > { %1402 = vsyncadd (%p1543_p10), %s222_s22, 4294954960  ;;  %v1439_v0 = vmov 0.0   ;;  %v377_v1 = vld [vmem:[%s1607_s5 + $0x170] sm:$0xff]  ;;  %v376_v2 = vld [vmem:[%s1607_s5 + $0x168] sm:$0xff]  ;;  %s1175_s20 = smul.u32 3, %s1602_s7  ;;  %s1752_s27 = scalar_lea.vmem [#allocation8], %s1174_s29 }
  0x50   : > { %701 = vmatprep.subr.mxu1 %v1439_v0  ;;  %v378_v3 = vld [vmem:[%s1607_s5 + $0x178] sm:$0xff]  ;;  %444 = vmatprep.subr.mxu0 %v377_v1  ;;  %v373_v5 = vld [vmem:[%s1607_s5 + $0x150] sm:$0xff]  ;;  %v375_v6 = vld [vmem:[%s1607_s5 + $0x160] sm:$0xff]  ;;  %s1171_s10 = smul.u32 384, %s1421_s15  ;;  %s1039_s19 = sshll.u32 %s1752_s27, 4  ;;  %s1947_s19 = int_to_ptr.vmem [resolvable:$true] %s1039_s19 }
  0x51   : > { %702 = vmatpush1.msra.mxu1 %v378_v3  ;;  %v374_v4 = vld [vmem:[%s1607_s5 + $0x158] sm:$0xff]  ;;  %445 = vmatpush1.msra.mxu0 %v376_v2  ;;  %v371_v7 = vld [vmem:[%s1607_s5 + $0x140] sm:$0xff]  ;;  %v372_v8 = vld [vmem:[%s1607_s5 + $0x148] sm:$0xff]  ;;  %s234_s23 = scalar_lea.vmem [#allocation7], %s1175_s20  ;;  %s1023_s4 = scalar_lea.sflag [#allocation4], %s1602_s7 }
  0x52   : > { %703 = vmatprep.subr.mxu1 %v1439_v0  ;;  %446 = vmatprep.subr.mxu0 %v374_v4  ;;  %v370_v9 = vld [vmem:[%s1607_s5 + $0x138] sm:$0xff]  ;;  %v368_v10 = vld [vmem:[%s1607_s5 + $0x128] sm:$0xff]  ;;  %v369_v11 = vld [vmem:[%s1607_s5 + $0x130] sm:$0xff]  ;;  %s1944_s6 = scalar_lea.hbm %s2002_s3, %s1171_s10  ;;  %s1345_s8 = scalar_lea.vmem %s1947_s19, 12288 }
  0x53   : > { %704 = vmatpush1.msra.mxu1 %v375_v6  ;;  %447 = vmatpush1.msra.mxu0 %v373_v5  ;;  %v367_v12 = vld [vmem:[%s1607_s5 + $0x120] sm:$0xff]  ;;  %v365_v13 = vld [vmem:[%s1607_s5 + $0x110] sm:$0xff]  ;;  %v366_v14 = vld [vmem:[%s1607_s5 + $0x118] sm:$0xff]  ;;  %p1346_p7 = scmp.ne.s32.totalorder %s1947_s19, %s1345_s8  ;;  %p2015_p10 = scmp.ne.s32.totalorder %s2008_s25, 0 }
  0x54   : > { %705 = vmatprep.subr.mxu1 %v1439_v0  ;;  %448 = vmatprep.subr.mxu0 %v371_v7  ;;  %v364_v15 = vld [vmem:[%s1607_s5 + $0x108] sm:$0xff]  ;;  %v362_v16 = vld [vmem:[%s1607_s5 + $0xf8] sm:$0xff]  ;;  %v363_v17 = vld [vmem:[%s1607_s5 + $0x100] sm:$0xff]  ;;  %s1440_s9 = smov [#allocation8]  }
  0x55   : > { %706 = vmatpush1.msra.mxu1 %v372_v8  ;;  %449 = vmatpush1.msra.mxu0 %v370_v9  ;;  %v361_v18 = vld [vmem:[%s1607_s5 + $0xf0] sm:$0xff]  ;;  %v359_v19 = vld [vmem:[%s1607_s5 + $0xe0] sm:$0xff]  ;;  %v360_v20 = vld [vmem:[%s1607_s5 + $0xe8] sm:$0xff]  ;;  %p1347_p2 = pnand %p1346_p7, %p2015_p10  ;;  %s1349_s11 = sshll.u32 %s1440_s9, 4  ;;  %s1350_s11 = int_to_ptr.vmem [resolvable:$false] %s1349_s11 }
  0x56   : > { %707 = vmatprep.subr.mxu1 %v1439_v0  ;;  %450 = vmatprep.subr.mxu0 %v368_v10  ;;  %v358_v21 = vld [vmem:[%s1607_s5 + $0xd8] sm:$0xff]  ;;  %v356_v22 = vld [vmem:[%s1607_s5 + $0xc8] sm:$0xff]  ;;  %v357_v23 = vld [vmem:[%s1607_s5 + $0xd0] sm:$0xff]  ;;  %s1351_s21 = scalar_lea.vmem %s1350_s11, 24576  ;;  %p1352_p0 = scmp.lt.s32.totalorder %s1947_s19, %s1350_s11 }
  0x57   : > { %708 = vmatpush1.msra.mxu1 %v369_v11  ;;  %451 = vmatpush1.msra.mxu0 %v367_v12  ;;  %v355_v24 = vld [vmem:[%s1607_s5 + $0xc0] sm:$0xff]  ;;  %v353_v25 = vld [vmem:[%s1607_s5 + $0xb0] sm:$0xff]  ;;  %v354_v26 = vld [vmem:[%s1607_s5 + $0xb8] sm:$0xff]  ;;  %p1348_p1 = pneg %p1347_p2  ;;  %p1353_p3 = scmp.lt.s32.totalorder %s1351_s21, %s1345_s8 }
  0x58   : > { %709 = vmatprep.subr.mxu1 %v1439_v0  ;;  %452 = vmatprep.subr.mxu0 %v365_v13  ;;  %v352_v27 = vld [vmem:[%s1607_s5 + $0xa8] sm:$0xff]  ;;  %v350_v28 = vld [vmem:[%s1607_s5 + $0x98] sm:$0xff]  ;;  %v351_v29 = vld [vmem:[%s1607_s5 + $0xa0] sm:$0xff] }
  0x59   : > { %710 = vmatpush1.msra.mxu1 %v366_v14  ;;  %453 = vmatpush1.msra.mxu0 %v364_v15  ;;  %v349_v30 = vld [vmem:[%s1607_s5 + $0x90] sm:$0xff]  ;;  %v347_v31 = vld [vmem:[%s1607_s5 + $0x80] sm:$0xff]  ;;  %v348_v32 = vld [vmem:[%s1607_s5 + $0x88] sm:$0xff]  ;;  %p1354_p4 = por %p1353_p3, %p1352_p0 }
  0x5a   : > { %711 = vmatprep.subr.mxu1 %v1439_v0  ;;  %454 = vmatprep.subr.mxu0 %v362_v16  ;;  %v346_v33 = vld [vmem:[%s1607_s5 + $0x78] sm:$0xff]  ;;  %v344_v34 = vld [vmem:[%s1607_s5 + $0x68] sm:$0xff]  ;;  %v345_v35 = vld [vmem:[%s1607_s5 + $0x70] sm:$0xff] }
  0x5b   : > { %712 = vmatpush1.msra.mxu1 %v363_v17  ;;  %455 = vmatpush1.msra.mxu0 %v361_v18  ;;  %v343_v36 = vld [vmem:[%s1607_s5 + $0x60] sm:$0xff]  ;;  %v341_v37 = vld [vmem:[%s1607_s5 + $0x50] sm:$0xff]  ;;  %v342_v38 = vld [vmem:[%s1607_s5 + $0x58] sm:$0xff]  ;;  %p1355_p6 = pnand %p1354_p4, %p1348_p1 }
  0x5c   : > { %713 = vmatprep.subr.mxu1 %v1439_v0  ;;  %456 = vmatprep.subr.mxu0 %v359_v19  ;;  %v340_v39 = vld [vmem:[%s1607_s5 + $0x48] sm:$0xff]  ;;  %v338_v40 = vld [vmem:[%s1607_s5 + $0x38] sm:$0xff]  ;;  %v339_v41 = vld [vmem:[%s1607_s5 + $0x40] sm:$0xff] }
  0x5d   : > { %714 = vmatpush1.msra.mxu1 %v360_v20  ;;  %457 = vmatpush1.msra.mxu0 %v358_v21  ;;  %v337_v42 = vld [vmem:[%s1607_s5 + $0x30] sm:$0xff]  ;;  %v335_v43 = vld [vmem:[%s1607_s5 + $0x20] sm:$0xff]  ;;  %v336_v44 = vld [vmem:[%s1607_s5 + $0x28] sm:$0xff] }
  0x5e   : > { %715 = vmatprep.subr.mxu1 %v1439_v0  ;;  %458 = vmatprep.subr.mxu0 %v356_v22  ;;  %v334_v45 = vld [vmem:[%s1607_s5 + $0x18] sm:$0xff]  ;;  %v332_v46 = vld [vmem:[%s1607_s5 + $0x8] sm:$0xff]  ;;  %v333_v47 = vld [vmem:[%s1607_s5 + $0x10] sm:$0xff] }
  0x5f   : > { %716 = vmatpush1.msra.mxu1 %v357_v23  ;;  %459 = vmatpush1.msra.mxu0 %v355_v24  ;;  %v331_v48 = vld [vmem:[%s1607_s5] sm:$0xff]  ;;  %v425_v49 = vld [vmem:[%s1607_s5 + $0x2f0] sm:$0xff]  ;;  %v426_v50 = vld [vmem:[%s1607_s5 + $0x2f8] sm:$0xff] }
  0x60   : > { %717 = vmatprep.subr.mxu1 %v1439_v0  ;;  %460 = vmatprep.subr.mxu0 %v353_v25  ;;  %v424_v51 = vld [vmem:[%s1607_s5 + $0x2e8] sm:$0xff]  ;;  %v422_v52 = vld [vmem:[%s1607_s5 + $0x2d8] sm:$0xff]  ;;  %v423_v53 = vld [vmem:[%s1607_s5 + $0x2e0] sm:$0xff] }
  0x61   : > { %718 = vmatpush1.msra.mxu1 %v354_v26  ;;  %461 = vmatpush1.msra.mxu0 %v352_v27  ;;  %v421_v54 = vld [vmem:[%s1607_s5 + $0x2d0] sm:$0xff]  ;;  %v419_v55 = vld [vmem:[%s1607_s5 + $0x2c0] sm:$0xff]  ;;  %v420_v56 = vld [vmem:[%s1607_s5 + $0x2c8] sm:$0xff] }
  0x62   : > { %719 = vmatprep.subr.mxu1 %v1439_v0  ;;  %462 = vmatprep.subr.mxu0 %v350_v28  ;;  %v418_v57 = vld [vmem:[%s1607_s5 + $0x2b8] sm:$0xff]  ;;  %v416_v58 = vld [vmem:[%s1607_s5 + $0x2a8] sm:$0xff]  ;;  %v417_v59 = vld [vmem:[%s1607_s5 + $0x2b0] sm:$0xff] }
  0x63   : > { %720 = vmatpush1.msra.mxu1 %v351_v29  ;;  %463 = vmatpush1.msra.mxu0 %v349_v30  ;;  %v415_v60 = vld [vmem:[%s1607_s5 + $0x2a0] sm:$0xff]  ;;  %v413_v61 = vld [vmem:[%s1607_s5 + $0x290] sm:$0xff]  ;;  %v414_v62 = vld [vmem:[%s1607_s5 + $0x298] sm:$0xff] }
  0x64   : > { %721 = vmatprep.subr.mxu1 %v1439_v0  ;;  %464 = vmatprep.subr.mxu0 %v347_v31  ;;  %v412_v63 = vld [vmem:[%s1607_s5 + $0x288] sm:$0xff]  ;;  %v410_v1 = vld [vmem:[%s1607_s5 + $0x278] sm:$0xff]  ;;  %v411_v2 = vld [vmem:[%s1607_s5 + $0x280] sm:$0xff] }
  0x65   : > { %722 = vmatpush1.msra.mxu1 %v348_v32  ;;  %465 = vmatpush1.msra.mxu0 %v346_v33  ;;  %v409_v3 = vld [vmem:[%s1607_s5 + $0x270] sm:$0xff]  ;;  %v407_v4 = vld [vmem:[%s1607_s5 + $0x260] sm:$0xff]  ;;  %v408_v5 = vld [vmem:[%s1607_s5 + $0x268] sm:$0xff] }
  0x66   : > { %723 = vmatprep.subr.mxu1 %v1439_v0  ;;  %466 = vmatprep.subr.mxu0 %v344_v34  ;;  %v406_v6 = vld [vmem:[%s1607_s5 + $0x258] sm:$0xff]  ;;  %v404_v7 = vld [vmem:[%s1607_s5 + $0x248] sm:$0xff]  ;;  %v405_v8 = vld [vmem:[%s1607_s5 + $0x250] sm:$0xff] }
  0x67   : > { %724 = vmatpush1.msra.mxu1 %v345_v35  ;;  %467 = vmatpush1.msra.mxu0 %v343_v36  ;;  %v403_v9 = vld [vmem:[%s1607_s5 + $0x240] sm:$0xff]  ;;  %v401_v10 = vld [vmem:[%s1607_s5 + $0x230] sm:$0xff]  ;;  %v402_v11 = vld [vmem:[%s1607_s5 + $0x238] sm:$0xff] }
  0x68   : > { %725 = vmatprep.subr.mxu1 %v1439_v0  ;;  %468 = vmatprep.subr.mxu0 %v341_v37  ;;  %v400_v12 = vld [vmem:[%s1607_s5 + $0x228] sm:$0xff]  ;;  %v398_v13 = vld [vmem:[%s1607_s5 + $0x218] sm:$0xff]  ;;  %v399_v14 = vld [vmem:[%s1607_s5 + $0x220] sm:$0xff] }
  0x69   : > { %726 = vmatpush1.msra.mxu1 %v342_v38  ;;  %469 = vmatpush1.msra.mxu0 %v340_v39  ;;  %v397_v15 = vld [vmem:[%s1607_s5 + $0x210] sm:$0xff]  ;;  %v395_v16 = vld [vmem:[%s1607_s5 + $0x200] sm:$0xff]  ;;  %v396_v17 = vld [vmem:[%s1607_s5 + $0x208] sm:$0xff] }
  0x6a   : > { %727 = vmatprep.subr.mxu1 %v1439_v0  ;;  %470 = vmatprep.subr.mxu0 %v338_v40  ;;  %v394_v18 = vld [vmem:[%s1607_s5 + $0x1f8] sm:$0xff]  ;;  %v392_v19 = vld [vmem:[%s1607_s5 + $0x1e8] sm:$0xff]  ;;  %v393_v20 = vld [vmem:[%s1607_s5 + $0x1f0] sm:$0xff] }
  0x6b   : > { %728 = vmatpush1.msra.mxu1 %v339_v41  ;;  %471 = vmatpush1.msra.mxu0 %v337_v42  ;;  %v391_v21 = vld [vmem:[%s1607_s5 + $0x1e0] sm:$0xff]  ;;  %v389_v22 = vld [vmem:[%s1607_s5 + $0x1d0] sm:$0xff]  ;;  %v390_v23 = vld [vmem:[%s1607_s5 + $0x1d8] sm:$0xff] }
  0x6c   : > { %729 = vmatprep.subr.mxu1 %v1439_v0  ;;  %472 = vmatprep.subr.mxu0 %v335_v43  ;;  %v388_v24 = vld [vmem:[%s1607_s5 + $0x1c8] sm:$0xff]  ;;  %v386_v25 = vld [vmem:[%s1607_s5 + $0x1b8] sm:$0xff]  ;;  %v387_v26 = vld [vmem:[%s1607_s5 + $0x1c0] sm:$0xff] }
  0x6d   : > { %730 = vmatpush1.msra.mxu1 %v336_v44  ;;  %473 = vmatpush1.msra.mxu0 %v334_v45  ;;  %v385_v27 = vld [vmem:[%s1607_s5 + $0x1b0] sm:$0xff]  ;;  %v383_v28 = vld [vmem:[%s1607_s5 + $0x1a0] sm:$0xff]  ;;  %v384_v29 = vld [vmem:[%s1607_s5 + $0x1a8] sm:$0xff] }
  0x6e   : > { %731 = vmatprep.subr.mxu1 %v1439_v0  ;;  %474 = vmatprep.subr.mxu0 %v332_v46  ;;  %v382_v30 = vld [vmem:[%s1607_s5 + $0x198] sm:$0xff]  ;;  %v380_v31 = vld [vmem:[%s1607_s5 + $0x188] sm:$0xff]  ;;  %v379_v33 = vld [vmem:[%s1607_s5 + $0x180] sm:$0xff] }
  0x6f   : > { %732 = vmatpush1.msra.mxu1 %v333_v47  ;;  %475 = vmatpush1.msra.mxu0 %v331_v48  ;;  %v268_v32 = vld [vmem:[#allocation2 + $0x8] sm:$0xff]  ;;  %v381_v34 = vld [vmem:[%s1607_s5 + $0x190] sm:$0xff]  ;;  %v267_v35 = vld [vmem:[#allocation2] sm:$0xff] }
  0x70   : > { %733 = vmatprep.subr.mxu1 %v1439_v0  ;;  %476 = vmatprep.subr.mxu0 %v425_v49  ;;  %v270_v36 = vld [vmem:[#allocation2 + $0x18] sm:$0xff]  ;;  %v269_v37 = vld [vmem:[#allocation2 + $0x10] sm:$0xff]  ;;  %v272_v38 = vld [vmem:[#allocation2 + $0x28] sm:$0xff] }
  0x71   : > { %734 = vmatpush2.msra.mxu1 %v426_v50  ;;  %477 = vmatpush2.msra.mxu0 %v424_v51  ;;  %v271_v39 = vld [vmem:[#allocation2 + $0x20] sm:$0xff]  ;;  %v274_v40 = vld [vmem:[#allocation2 + $0x38] sm:$0xff]  ;;  %v276_v41 = vld [vmem:[#allocation2 + $0x48] sm:$0xff] }
  0x72   : > { %735 = vmatprep.subr.mxu1 %v1439_v0  ;;  %478 = vmatprep.subr.mxu0 %v422_v52  ;;  %v275_v42 = vld [vmem:[#allocation2 + $0x40] sm:$0xff]  ;;  %v278_v43 = vld [vmem:[#allocation2 + $0x58] sm:$0xff]  ;;  %v277_v44 = vld [vmem:[#allocation2 + $0x50] sm:$0xff] }
  0x73   : > { %736 = vmatpush2.msra.mxu1 %v423_v53  ;;  %479 = vmatpush2.msra.mxu0 %v421_v54  ;;  %v280_v45 = vld [vmem:[#allocation2 + $0x68] sm:$0xff]  ;;  %v279_v46 = vld [vmem:[#allocation2 + $0x60] sm:$0xff]  ;;  %v282_v47 = vld [vmem:[#allocation2 + $0x78] sm:$0xff] }
  0x74   : > { %737 = vmatprep.subr.mxu1 %v1439_v0  ;;  %480 = vmatprep.subr.mxu0 %v419_v55  ;;  %v281_v48 = vld [vmem:[#allocation2 + $0x70] sm:$0xff]  ;;  %v284_v49 = vld [vmem:[#allocation2 + $0x88] sm:$0xff]  ;;  %v283_v50 = vld [vmem:[#allocation2 + $0x80] sm:$0xff] }
  0x75   : > { %738 = vmatpush2.msra.mxu1 %v420_v56  ;;  %481 = vmatpush2.msra.mxu0 %v418_v57  ;;  %v286_v51 = vld [vmem:[#allocation2 + $0x98] sm:$0xff]  ;;  %v285_v52 = vld [vmem:[#allocation2 + $0x90] sm:$0xff]  ;;  %v288_v53 = vld [vmem:[#allocation2 + $0xa8] sm:$0xff] }
  0x76   : > { %739 = vmatprep.subr.mxu1 %v1439_v0  ;;  %482 = vmatprep.subr.mxu0 %v416_v58  ;;  %v287_v54 = vld [vmem:[#allocation2 + $0xa0] sm:$0xff]  ;;  %v290_v55 = vld [vmem:[#allocation2 + $0xb8] sm:$0xff]  ;;  %v289_v56 = vld [vmem:[#allocation2 + $0xb0] sm:$0xff] }
  0x77   : > { %740 = vmatpush2.msra.mxu1 %v417_v59  ;;  %483 = vmatpush2.msra.mxu0 %v415_v60  ;;  %v292_v57 = vld [vmem:[#allocation2 + $0xc8] sm:$0xff]  ;;  %v291_v58 = vld [vmem:[#allocation2 + $0xc0] sm:$0xff]  ;;  %v294_v59 = vld [vmem:[#allocation2 + $0xd8] sm:$0xff] }
  0x78   : > { %741 = vmatprep.subr.mxu1 %v1439_v0  ;;  %484 = vmatprep.subr.mxu0 %v413_v61  ;;  %v293_v60 = vld [vmem:[#allocation2 + $0xd0] sm:$0xff]  ;;  %v296_v61 = vld [vmem:[#allocation2 + $0xe8] sm:$0xff] }
  0x79   : > { %742 = vmatpush2.msra.mxu1 %v414_v62  ;;  %485 = vmatpush2.msra.mxu0 %v412_v63  ;;  %v295_v62 = vld [vmem:[#allocation2 + $0xe0] sm:$0xff]  ;;  %v298_v63 = vld [vmem:[#allocation2 + $0xf8] sm:$0xff] }
  0x7a   : > { %743 = vmatprep.subr.mxu1 %v1439_v0  ;;  %486 = vmatprep.subr.mxu0 %v410_v1  ;;  %v297_v1 = vld [vmem:[#allocation2 + $0xf0] sm:$0xff] }
  0x7b   : > { %744 = vmatpush2.msra.mxu1 %v411_v2  ;;  %487 = vmatpush2.msra.mxu0 %v409_v3  ;;  %v300_v2 = vld [vmem:[#allocation2 + $0x108] sm:$0xff]  ;;  %v299_v3 = vld [vmem:[#allocation2 + $0x100] sm:$0xff] }
  0x7c   : > { %745 = vmatprep.subr.mxu1 %v1439_v0  ;;  %488 = vmatprep.subr.mxu0 %v407_v4  ;;  %v302_v4 = vld [vmem:[#allocation2 + $0x118] sm:$0xff] }
  0x7d   : > { %746 = vmatpush2.msra.mxu1 %v408_v5  ;;  %489 = vmatpush2.msra.mxu0 %v406_v6  ;;  %v301_v5 = vld [vmem:[#allocation2 + $0x110] sm:$0xff]  ;;  %v304_v6 = vld [vmem:[#allocation2 + $0x128] sm:$0xff] }
  0x7e   : > { %747 = vmatprep.subr.mxu1 %v1439_v0  ;;  %490 = vmatprep.subr.mxu0 %v404_v7  ;;  %v303_v7 = vld [vmem:[#allocation2 + $0x120] sm:$0xff] }
  0x7f   : > { %748 = vmatpush2.msra.mxu1 %v405_v8  ;;  %491 = vmatpush2.msra.mxu0 %v403_v9  ;;  %v306_v8 = vld [vmem:[#allocation2 + $0x138] sm:$0xff]  ;;  %v305_v9 = vld [vmem:[#allocation2 + $0x130] sm:$0xff] }
  0x80   : > { %749 = vmatprep.subr.mxu1 %v1439_v0  ;;  %492 = vmatprep.subr.mxu0 %v401_v10  ;;  %v308_v10 = vld [vmem:[#allocation2 + $0x148] sm:$0xff] }
  0x81   : > { %750 = vmatpush2.msra.mxu1 %v402_v11  ;;  %493 = vmatpush2.msra.mxu0 %v400_v12  ;;  %v307_v11 = vld [vmem:[#allocation2 + $0x140] sm:$0xff]  ;;  %v310_v12 = vld [vmem:[#allocation2 + $0x158] sm:$0xff] }
  0x82   : > { %751 = vmatprep.subr.mxu1 %v1439_v0  ;;  %494 = vmatprep.subr.mxu0 %v398_v13  ;;  %v309_v13 = vld [vmem:[#allocation2 + $0x150] sm:$0xff] }
  0x83   : > { %752 = vmatpush2.msra.mxu1 %v399_v14  ;;  %495 = vmatpush2.msra.mxu0 %v397_v15  ;;  %v312_v14 = vld [vmem:[#allocation2 + $0x168] sm:$0xff]  ;;  %v311_v15 = vld [vmem:[#allocation2 + $0x160] sm:$0xff] }
  0x84   : > { %753 = vmatprep.subr.mxu1 %v1439_v0  ;;  %496 = vmatprep.subr.mxu0 %v395_v16  ;;  %v314_v16 = vld [vmem:[#allocation2 + $0x178] sm:$0xff] }
  0x85   : > { %754 = vmatpush2.msra.mxu1 %v396_v17  ;;  %497 = vmatpush2.msra.mxu0 %v394_v18  ;;  %v313_v17 = vld [vmem:[#allocation2 + $0x170] sm:$0xff]  ;;  %v316_v18 = vld [vmem:[#allocation2 + $0x188] sm:$0xff] }
  0x86   : > { %755 = vmatprep.subr.mxu1 %v1439_v0  ;;  %498 = vmatprep.subr.mxu0 %v392_v19  ;;  %v315_v19 = vld [vmem:[#allocation2 + $0x180] sm:$0xff] }
  0x87   : > { %756 = vmatpush2.msra.mxu1 %v393_v20  ;;  %499 = vmatpush2.msra.mxu0 %v391_v21  ;;  %v318_v20 = vld [vmem:[#allocation2 + $0x198] sm:$0xff]  ;;  %v317_v21 = vld [vmem:[#allocation2 + $0x190] sm:$0xff] }
  0x88   : > { %757 = vmatprep.subr.mxu1 %v1439_v0  ;;  %500 = vmatprep.subr.mxu0 %v389_v22  ;;  %v320_v22 = vld [vmem:[#allocation2 + $0x1a8] sm:$0xff] }
  0x89   : > { %758 = vmatpush2.msra.mxu1 %v390_v23  ;;  %501 = vmatpush2.msra.mxu0 %v388_v24  ;;  %v319_v23 = vld [vmem:[#allocation2 + $0x1a0] sm:$0xff]  ;;  %v322_v24 = vld [vmem:[#allocation2 + $0x1b8] sm:$0xff] }
  0x8a   : > { %759 = vmatprep.subr.mxu1 %v1439_v0  ;;  %502 = vmatprep.subr.mxu0 %v386_v25  ;;  %v321_v25 = vld [vmem:[#allocation2 + $0x1b0] sm:$0xff] }
  0x8b   : > { %760 = vmatpush2.msra.mxu1 %v387_v26  ;;  %503 = vmatpush2.msra.mxu0 %v385_v27  ;;  %v324_v26 = vld [vmem:[#allocation2 + $0x1c8] sm:$0xff]  ;;  %v323_v27 = vld [vmem:[#allocation2 + $0x1c0] sm:$0xff] }
  0x8c   : > { %761 = vmatprep.subr.mxu1 %v1439_v0  ;;  %504 = vmatprep.subr.mxu0 %v383_v28  ;;  %v326_v28 = vld [vmem:[#allocation2 + $0x1d8] sm:$0xff] }
  0x8d   : > { %762 = vmatpush2.msra.mxu1 %v384_v29  ;;  %505 = vmatpush2.msra.mxu0 %v382_v30  ;;  %v325_v29 = vld [vmem:[#allocation2 + $0x1d0] sm:$0xff]  ;;  %v328_v30 = vld [vmem:[#allocation2 + $0x1e8] sm:$0xff] }
  0x8e   : > { %763 = vmatprep.subr.mxu1 %v1439_v0  ;;  %506 = vmatprep.subr.mxu0 %v380_v31  ;;  %v273_v0 = vld [vmem:[#allocation2 + $0x30] sm:$0xff]  ;;  %v327_v31 = vld [vmem:[#allocation2 + $0x1e0] sm:$0xff] }
  0x8f   : > { %508 = vmatprep.mubr.f32.mxu0 %v268_v32  ;;  %507 = vmatpush2.msra.mxu0 %v379_v33  ;;  %v329_v33 = vld [vmem:[#allocation2 + $0x1f0] sm:$0xff] }
  0x90   : > { %764 = vmatpush2.msra.mxu1 %v381_v34  ;;  %765 = vmatprep.mubr.f32.mxu1 %v268_v32  ;;  %v330_v32 = vld [vmem:[#allocation2 + $0x1f8] sm:$0xff]  ;;  %v429_v34 = vlaneseq }
  0x91   : > { %509 = vmatmul.mubr.f32.vlgmr.msra.gmra.mxu0 %v267_v35  ;;  %766 = vmatmul.mubr.f32.vlgmr.msra.gmra.mxu1 %v267_v35 }
  0x92   : > { %514 = vmatprep.mubr.f32.mxu0 %v270_v36  ;;  %770 = vmatprep.mubr.f32.mxu1 %v270_v36  ;;  %v430_v35 = vshrl.u32 %v429_v34, 7 }
  0x94   : > { %v431_v36 = vsub.s32 0, %v430_v35 }
  0x95   : > { %515 = vmatmul.mubr.f32.gmra.mxu0 %v269_v37  ;;  %771 = vmatmul.mubr.f32.gmra.mxu1 %v269_v37  ;;  %v427_v37 = vld [vmem:[%s234_s23] sm:$0x7] }
  0x96   : > { %520 = vmatprep.mubr.f32.mxu0 %v272_v38  ;;  %775 = vmatprep.mubr.f32.mxu1 %v272_v38  ;;  %v439_v38 = vsub.s32 2, %v430_v35 }
  0x99   : > { %521 = vmatmul.mubr.f32.gmra.mxu0 %v271_v39  ;;  %776 = vmatmul.mubr.f32.gmra.mxu1 %v271_v39  ;;  %v435_v39 = vsub.s32 1, %v430_v35 }
  0x9a   : > { %526 = vmatprep.mubr.f32.mxu0 %v274_v40  ;;  %780 = vmatprep.mubr.f32.mxu1 %v274_v40  ;;  %v1742_v40 = vrot.slane %v427_v37, %v431_v36 }
  0x9d   : > { %527 = vmatmul.mubr.f32.gmra.mxu0 %v273_v0  ;;  %781 = vmatmul.mubr.f32.gmra.mxu1 %v273_v0  ;;  %v1744_v0 = vrot.slane %v427_v37, %v439_v38 }
  0x9e   : > { %532 = vmatprep.mubr.f32.mxu0 %v276_v41  ;;  %785 = vmatprep.mubr.f32.mxu1 %v276_v41  ;;  %v1746_v41 = vrot.slane %v427_v37, %v435_v39 }
  0xa1   : > { %533 = vmatmul.mubr.f32.gmra.mxu0 %v275_v42  ;;  %786 = vmatmul.mubr.f32.gmra.mxu1 %v275_v42 }
  0xa2   : > { %538 = vmatprep.mubr.f32.mxu0 %v278_v43  ;;  %790 = vmatprep.mubr.f32.mxu1 %v278_v43 }
  0xa5   : > { %539 = vmatmul.mubr.f32.gmra.mxu0 %v277_v44  ;;  %791 = vmatmul.mubr.f32.gmra.mxu1 %v277_v44 }
  0xa6   : > { %544 = vmatprep.mubr.f32.mxu0 %v280_v45  ;;  %795 = vmatprep.mubr.f32.mxu1 %v280_v45 }
  0xa9   : > { %545 = vmatmul.mubr.f32.gmra.mxu0 %v279_v46  ;;  %796 = vmatmul.mubr.f32.gmra.mxu1 %v279_v46 }
  0xaa   : > { %550 = vmatprep.mubr.f32.mxu0 %v282_v47  ;;  %800 = vmatprep.mubr.f32.mxu1 %v282_v47 }
  0xad   : > { %551 = vmatmul.mubr.f32.gmra.mxu0 %v281_v48  ;;  %801 = vmatmul.mubr.f32.gmra.mxu1 %v281_v48 }
  0xae   : > { %556 = vmatprep.mubr.f32.mxu0 %v284_v49  ;;  %805 = vmatprep.mubr.f32.mxu1 %v284_v49 }
  0xb1   : > { %557 = vmatmul.mubr.f32.gmra.mxu0 %v283_v50  ;;  %806 = vmatmul.mubr.f32.gmra.mxu1 %v283_v50 }
  0xb2   : > { %562 = vmatprep.mubr.f32.mxu0 %v286_v51  ;;  %810 = vmatprep.mubr.f32.mxu1 %v286_v51 }
  0xb5   : > { %563 = vmatmul.mubr.f32.gmra.mxu0 %v285_v52  ;;  %811 = vmatmul.mubr.f32.gmra.mxu1 %v285_v52 }
  0xb6   : > { %568 = vmatprep.mubr.f32.mxu0 %v288_v53  ;;  %815 = vmatprep.mubr.f32.mxu1 %v288_v53 }
  0xb9   : > { %569 = vmatmul.mubr.f32.gmra.mxu0 %v287_v54  ;;  %816 = vmatmul.mubr.f32.gmra.mxu1 %v287_v54 }
  0xba   : > { %574 = vmatprep.mubr.f32.mxu0 %v290_v55  ;;  %820 = vmatprep.mubr.f32.mxu1 %v290_v55 }
  0xbd   : > { %575 = vmatmul.mubr.f32.gmra.mxu0 %v289_v56  ;;  %821 = vmatmul.mubr.f32.gmra.mxu1 %v289_v56 }
  0xbe   : > { %580 = vmatprep.mubr.f32.mxu0 %v292_v57  ;;  %825 = vmatprep.mubr.f32.mxu1 %v292_v57 }
  0xc1   : > { %581 = vmatmul.mubr.f32.gmra.mxu0 %v291_v58  ;;  %826 = vmatmul.mubr.f32.gmra.mxu1 %v291_v58 }
  0xc2   : > { %586 = vmatprep.mubr.f32.mxu0 %v294_v59  ;;  %830 = vmatprep.mubr.f32.mxu1 %v294_v59 }
  0xc5   : > { %587 = vmatmul.mubr.f32.gmra.mxu0 %v293_v60  ;;  %831 = vmatmul.mubr.f32.gmra.mxu1 %v293_v60 }
  0xc6   : > { %592 = vmatprep.mubr.f32.mxu0 %v296_v61  ;;  %835 = vmatprep.mubr.f32.mxu1 %v296_v61 }
  0xc9   : > { %593 = vmatmul.mubr.f32.gmra.mxu0 %v295_v62  ;;  %836 = vmatmul.mubr.f32.gmra.mxu1 %v295_v62 }
  0xca   : > { %598 = vmatprep.mubr.f32.mxu0 %v298_v63  ;;  %840 = vmatprep.mubr.f32.mxu1 %v298_v63 }
  0xcd   : > { %599 = vmatmul.mubr.f32.gmra.mxu0 %v297_v1  ;;  %841 = vmatmul.mubr.f32.gmra.mxu1 %v297_v1 }
  0xce   : > { %604 = vmatprep.mubr.f32.mxu0 %v300_v2  ;;  %845 = vmatprep.mubr.f32.mxu1 %v300_v2 }
  0xd1   : > { %605 = vmatmul.mubr.f32.gmra.mxu0 %v299_v3  ;;  %846 = vmatmul.mubr.f32.gmra.mxu1 %v299_v3 }
  0xd2   : > { %610 = vmatprep.mubr.f32.mxu0 %v302_v4  ;;  %850 = vmatprep.mubr.f32.mxu1 %v302_v4 }
  0xd5   : > { %611 = vmatmul.mubr.f32.gmra.mxu0 %v301_v5  ;;  %851 = vmatmul.mubr.f32.gmra.mxu1 %v301_v5 }
  0xd6   : > { %616 = vmatprep.mubr.f32.mxu0 %v304_v6  ;;  %855 = vmatprep.mubr.f32.mxu1 %v304_v6 }
  0xd9   : > { %617 = vmatmul.mubr.f32.gmra.mxu0 %v303_v7  ;;  %856 = vmatmul.mubr.f32.gmra.mxu1 %v303_v7 }
  0xda   : > { %622 = vmatprep.mubr.f32.mxu0 %v306_v8  ;;  %860 = vmatprep.mubr.f32.mxu1 %v306_v8 }
  0xdd   : > { %623 = vmatmul.mubr.f32.gmra.mxu0 %v305_v9  ;;  %861 = vmatmul.mubr.f32.gmra.mxu1 %v305_v9 }
  0xde   : > { %628 = vmatprep.mubr.f32.mxu0 %v308_v10  ;;  %865 = vmatprep.mubr.f32.mxu1 %v308_v10 }
  0xe1   : > { %629 = vmatmul.mubr.f32.gmra.mxu0 %v307_v11  ;;  %866 = vmatmul.mubr.f32.gmra.mxu1 %v307_v11 }
  0xe2   : > { %634 = vmatprep.mubr.f32.mxu0 %v310_v12  ;;  %870 = vmatprep.mubr.f32.mxu1 %v310_v12 }
  0xe5   : > { %635 = vmatmul.mubr.f32.gmra.mxu0 %v309_v13  ;;  %871 = vmatmul.mubr.f32.gmra.mxu1 %v309_v13 }
  0xe6   : > { %640 = vmatprep.mubr.f32.mxu0 %v312_v14  ;;  %875 = vmatprep.mubr.f32.mxu1 %v312_v14 }
  0xe9   : > { %641 = vmatmul.mubr.f32.gmra.mxu0 %v311_v15  ;;  %876 = vmatmul.mubr.f32.gmra.mxu1 %v311_v15 }
  0xea   : > { %646 = vmatprep.mubr.f32.mxu0 %v314_v16  ;;  %880 = vmatprep.mubr.f32.mxu1 %v314_v16 }
  0xed   : > { %647 = vmatmul.mubr.f32.gmra.mxu0 %v313_v17  ;;  %881 = vmatmul.mubr.f32.gmra.mxu1 %v313_v17 }
  0xee   : > { %652 = vmatprep.mubr.f32.mxu0 %v316_v18  ;;  %885 = vmatprep.mubr.f32.mxu1 %v316_v18 }
  0xf1   : > { %653 = vmatmul.mubr.f32.gmra.mxu0 %v315_v19  ;;  %886 = vmatmul.mubr.f32.gmra.mxu1 %v315_v19 }
  0xf2   : > { %658 = vmatprep.mubr.f32.mxu0 %v318_v20  ;;  %890 = vmatprep.mubr.f32.mxu1 %v318_v20 }
  0xf5   : > { %659 = vmatmul.mubr.f32.gmra.mxu0 %v317_v21  ;;  %891 = vmatmul.mubr.f32.gmra.mxu1 %v317_v21 }
  0xf6   : > { %664 = vmatprep.mubr.f32.mxu0 %v320_v22  ;;  %895 = vmatprep.mubr.f32.mxu1 %v320_v22 }
  0xf9   : > { %665 = vmatmul.mubr.f32.gmra.mxu0 %v319_v23  ;;  %896 = vmatmul.mubr.f32.gmra.mxu1 %v319_v23 }
  0xfa   : > { %670 = vmatprep.mubr.f32.mxu0 %v322_v24  ;;  %900 = vmatprep.mubr.f32.mxu1 %v322_v24 }
  0xfd   : > { %671 = vmatmul.mubr.f32.gmra.mxu0 %v321_v25  ;;  %901 = vmatmul.mubr.f32.gmra.mxu1 %v321_v25 }
  0xfe   : > { %676 = vmatprep.mubr.f32.mxu0 %v324_v26  ;;  %905 = vmatprep.mubr.f32.mxu1 %v324_v26 }
 0x101   : > { %677 = vmatmul.mubr.f32.gmra.mxu0 %v323_v27  ;;  %906 = vmatmul.mubr.f32.gmra.mxu1 %v323_v27 }
 0x102   : > { %682 = vmatprep.mubr.f32.mxu0 %v326_v28  ;;  %910 = vmatprep.mubr.f32.mxu1 %v326_v28 }
 0x105   : > { %683 = vmatmul.mubr.f32.gmra.mxu0 %v325_v29  ;;  %911 = vmatmul.mubr.f32.gmra.mxu1 %v325_v29 }
 0x106   : > { %688 = vmatprep.mubr.f32.mxu0 %v328_v30  ;;  %915 = vmatprep.mubr.f32.mxu1 %v328_v30 }
 0x109   : > { %689 = vmatmul.mubr.f32.gmra.mxu0 %v327_v31  ;;  %916 = vmatmul.mubr.f32.gmra.mxu1 %v327_v31 }
 0x10a   : > { %694 = vmatprep.mubr.f32.mxu0 %v330_v32  ;;  %920 = vmatprep.mubr.f32.mxu1 %v330_v32 }
 0x10d   : > { %695 = vmatmul.mubr.f32.gmra.mxu0 %v329_v33  ;;  %921 = vmatmul.mubr.f32.gmra.mxu1 %v329_v33 }
 0x151   : > { %v510_v42 = vpop.f32.mrf.mxu0  ;;  %v767_v44 = vpop.f32.mrf.mxu1 }
 0x152   : > { %v511_v43 = vadd.f32 %v510_v42, %v1742_v40  ;;  %v768_v45 = vadd.f32 %v767_v44, %v1744_v0 }
 0x153   : > { %v512_v46 = vpop.f32.mrf.mxu0  ;;  %v769_v48 = vpop.f32.mrf.mxu1 }
 0x154   : > { %926 = vst [vmem:[%s1752_s27] sm:$0xff] %v511_v43  ;;  %v513_v47 = vadd.f32 %v512_v46, %v1746_v41  ;;  %928 = vst [vmem:[%s1752_s27 + $0x10] sm:$0xff] %v768_v45 }
 0x155   : > { %v516_v49 = vpop.f32.mrf.mxu0  ;;  %v772_v51 = vpop.f32.mrf.mxu1 }
 0x156   : > { %927 = vst [vmem:[%s1752_s27 + $0x8] sm:$0xff] %v513_v47  ;;  %v517_v50 = vadd.f32 %v516_v49, %v1742_v40  ;;  %v773_v52 = vadd.f32 %v772_v51, %v1744_v0 }
 0x157   : > { %v518_v53 = vpop.f32.mrf.mxu0  ;;  %v774_v55 = vpop.f32.mrf.mxu1 }
 0x158   : > { %929 = vst [vmem:[%s1752_s27 + $0x18] sm:$0xff] %v517_v50  ;;  %v519_v54 = vadd.f32 %v518_v53, %v1746_v41  ;;  %931 = vst [vmem:[%s1752_s27 + $0x28] sm:$0xff] %v773_v52 }
 0x159   : > { %v522_v56 = vpop.f32.mrf.mxu0  ;;  %v777_v58 = vpop.f32.mrf.mxu1 }
 0x15a   : > { %930 = vst [vmem:[%s1752_s27 + $0x20] sm:$0xff] %v519_v54  ;;  %v523_v57 = vadd.f32 %v522_v56, %v1742_v40  ;;  %v778_v59 = vadd.f32 %v777_v58, %v1744_v0 }
 0x15b   : > { %v524_v60 = vpop.f32.mrf.mxu0  ;;  %v779_v62 = vpop.f32.mrf.mxu1 }
 0x15c   : > { %932 = vst [vmem:[%s1752_s27 + $0x30] sm:$0xff] %v523_v57  ;;  %v525_v61 = vadd.f32 %v524_v60, %v1746_v41  ;;  %934 = vst [vmem:[%s1752_s27 + $0x40] sm:$0xff] %v778_v59 }
 0x15d   : > { %v528_v63 = vpop.f32.mrf.mxu0  ;;  %v782_v2 = vpop.f32.mrf.mxu1 }
 0x15e   : > { %933 = vst [vmem:[%s1752_s27 + $0x38] sm:$0xff] %v525_v61  ;;  %v529_v1 = vadd.f32 %v528_v63, %v1742_v40  ;;  %v783_v3 = vadd.f32 %v782_v2, %v1744_v0 }
 0x15f   : > { %v530_v4 = vpop.f32.mrf.mxu0  ;;  %v784_v6 = vpop.f32.mrf.mxu1 }
 0x160   : > { %935 = vst [vmem:[%s1752_s27 + $0x48] sm:$0xff] %v529_v1  ;;  %v531_v5 = vadd.f32 %v530_v4, %v1746_v41  ;;  %937 = vst [vmem:[%s1752_s27 + $0x58] sm:$0xff] %v783_v3 }
 0x161   : > { %v534_v7 = vpop.f32.mrf.mxu0  ;;  %v787_v9 = vpop.f32.mrf.mxu1 }
 0x162   : > { %936 = vst [vmem:[%s1752_s27 + $0x50] sm:$0xff] %v531_v5  ;;  %v535_v8 = vadd.f32 %v534_v7, %v1742_v40  ;;  %v788_v10 = vadd.f32 %v787_v9, %v1744_v0 }
 0x163   : > { %v536_v11 = vpop.f32.mrf.mxu0  ;;  %v789_v13 = vpop.f32.mrf.mxu1 }
 0x164   : > { %938 = vst [vmem:[%s1752_s27 + $0x60] sm:$0xff] %v535_v8  ;;  %v537_v12 = vadd.f32 %v536_v11, %v1746_v41  ;;  %940 = vst [vmem:[%s1752_s27 + $0x70] sm:$0xff] %v788_v10 }
 0x165   : > { %v540_v14 = vpop.f32.mrf.mxu0  ;;  %v792_v16 = vpop.f32.mrf.mxu1 }
 0x166   : > { %939 = vst [vmem:[%s1752_s27 + $0x68] sm:$0xff] %v537_v12  ;;  %v541_v15 = vadd.f32 %v540_v14, %v1742_v40  ;;  %v793_v17 = vadd.f32 %v792_v16, %v1744_v0 }
 0x167   : > { %v542_v18 = vpop.f32.mrf.mxu0  ;;  %v794_v20 = vpop.f32.mrf.mxu1 }
 0x168   : > { %941 = vst [vmem:[%s1752_s27 + $0x78] sm:$0xff] %v541_v15  ;;  %v543_v19 = vadd.f32 %v542_v18, %v1746_v41  ;;  %943 = vst [vmem:[%s1752_s27 + $0x88] sm:$0xff] %v793_v17 }
 0x169   : > { %v546_v21 = vpop.f32.mrf.mxu0  ;;  %v797_v23 = vpop.f32.mrf.mxu1 }
 0x16a   : > { %942 = vst [vmem:[%s1752_s27 + $0x80] sm:$0xff] %v543_v19  ;;  %v547_v22 = vadd.f32 %v546_v21, %v1742_v40  ;;  %v798_v24 = vadd.f32 %v797_v23, %v1744_v0 }
 0x16b   : > { %v548_v25 = vpop.f32.mrf.mxu0  ;;  %v799_v27 = vpop.f32.mrf.mxu1 }
 0x16c   : > { %944 = vst [vmem:[%s1752_s27 + $0x90] sm:$0xff] %v547_v22  ;;  %v549_v26 = vadd.f32 %v548_v25, %v1746_v41  ;;  %946 = vst [vmem:[%s1752_s27 + $0xa0] sm:$0xff] %v798_v24 }
 0x16d   : > { %v552_v28 = vpop.f32.mrf.mxu0  ;;  %v802_v30 = vpop.f32.mrf.mxu1 }
 0x16e   : > { %945 = vst [vmem:[%s1752_s27 + $0x98] sm:$0xff] %v549_v26  ;;  %v553_v29 = vadd.f32 %v552_v28, %v1742_v40  ;;  %v803_v31 = vadd.f32 %v802_v30, %v1744_v0 }
 0x16f   : > { %v554_v32 = vpop.f32.mrf.mxu0  ;;  %v804_v34 = vpop.f32.mrf.mxu1 }
 0x170   : > { %947 = vst [vmem:[%s1752_s27 + $0xa8] sm:$0xff] %v553_v29  ;;  %v555_v33 = vadd.f32 %v554_v32, %v1746_v41  ;;  %949 = vst [vmem:[%s1752_s27 + $0xb8] sm:$0xff] %v803_v31 }
 0x171   : > { %v558_v35 = vpop.f32.mrf.mxu0  ;;  %v807_v37 = vpop.f32.mrf.mxu1 }
 0x172   : > { %948 = vst [vmem:[%s1752_s27 + $0xb0] sm:$0xff] %v555_v33  ;;  %v559_v36 = vadd.f32 %v558_v35, %v1742_v40  ;;  %v808_v38 = vadd.f32 %v807_v37, %v1744_v0 }
 0x173   : > { %v560_v39 = vpop.f32.mrf.mxu0  ;;  %v809_v43 = vpop.f32.mrf.mxu1 }
 0x174   : > { %950 = vst [vmem:[%s1752_s27 + $0xc0] sm:$0xff] %v559_v36  ;;  %v561_v42 = vadd.f32 %v560_v39, %v1746_v41  ;;  %952 = vst [vmem:[%s1752_s27 + $0xd0] sm:$0xff] %v808_v38 }
 0x175   : > { %v564_v44 = vpop.f32.mrf.mxu0  ;;  %v812_v46 = vpop.f32.mrf.mxu1 }
 0x176   : > { %951 = vst [vmem:[%s1752_s27 + $0xc8] sm:$0xff] %v561_v42  ;;  %v565_v45 = vadd.f32 %v564_v44, %v1742_v40  ;;  %v813_v47 = vadd.f32 %v812_v46, %v1744_v0 }
 0x177   : > { %v566_v48 = vpop.f32.mrf.mxu0  ;;  %v814_v50 = vpop.f32.mrf.mxu1 }
 0x178   : > { %953 = vst [vmem:[%s1752_s27 + $0xd8] sm:$0xff] %v565_v45  ;;  %v567_v49 = vadd.f32 %v566_v48, %v1746_v41  ;;  %955 = vst [vmem:[%s1752_s27 + $0xe8] sm:$0xff] %v813_v47 }
 0x179   : > { %v570_v51 = vpop.f32.mrf.mxu0  ;;  %v817_v53 = vpop.f32.mrf.mxu1 }
 0x17a   : > { %954 = vst [vmem:[%s1752_s27 + $0xe0] sm:$0xff] %v567_v49  ;;  %v571_v52 = vadd.f32 %v570_v51, %v1742_v40  ;;  %v818_v54 = vadd.f32 %v817_v53, %v1744_v0 }
 0x17b   : > { %v572_v55 = vpop.f32.mrf.mxu0  ;;  %v819_v57 = vpop.f32.mrf.mxu1 }
 0x17c   : > { %956 = vst [vmem:[%s1752_s27 + $0xf0] sm:$0xff] %v571_v52  ;;  %v573_v56 = vadd.f32 %v572_v55, %v1746_v41  ;;  %958 = vst [vmem:[%s1752_s27 + $0x100] sm:$0xff] %v818_v54 }
 0x17d   : > { %v576_v58 = vpop.f32.mrf.mxu0  ;;  %v822_v60 = vpop.f32.mrf.mxu1 }
 0x17e   : > { %957 = vst [vmem:[%s1752_s27 + $0xf8] sm:$0xff] %v573_v56  ;;  %v577_v59 = vadd.f32 %v576_v58, %v1742_v40  ;;  %v823_v61 = vadd.f32 %v822_v60, %v1744_v0 }
 0x17f   : > { %v578_v62 = vpop.f32.mrf.mxu0  ;;  %v824_v1 = vpop.f32.mrf.mxu1 }
 0x180   : > { %959 = vst [vmem:[%s1752_s27 + $0x108] sm:$0xff] %v577_v59  ;;  %v579_v63 = vadd.f32 %v578_v62, %v1746_v41  ;;  %961 = vst [vmem:[%s1752_s27 + $0x118] sm:$0xff] %v823_v61 }
 0x181   : > { %v582_v2 = vpop.f32.mrf.mxu0  ;;  %v827_v4 = vpop.f32.mrf.mxu1 }
 0x182   : > { %960 = vst [vmem:[%s1752_s27 + $0x110] sm:$0xff] %v579_v63  ;;  %v583_v3 = vadd.f32 %v582_v2, %v1742_v40  ;;  %v828_v5 = vadd.f32 %v827_v4, %v1744_v0 }
 0x183   : > { %v584_v6 = vpop.f32.mrf.mxu0  ;;  %v829_v8 = vpop.f32.mrf.mxu1 }
 0x184   : > { %962 = vst [vmem:[%s1752_s27 + $0x120] sm:$0xff] %v583_v3  ;;  %v585_v7 = vadd.f32 %v584_v6, %v1746_v41  ;;  %964 = vst [vmem:[%s1752_s27 + $0x130] sm:$0xff] %v828_v5 }
 0x185   : > { %v588_v9 = vpop.f32.mrf.mxu0  ;;  %v832_v11 = vpop.f32.mrf.mxu1 }
 0x186   : > { %963 = vst [vmem:[%s1752_s27 + $0x128] sm:$0xff] %v585_v7  ;;  %v589_v10 = vadd.f32 %v588_v9, %v1742_v40  ;;  %v833_v12 = vadd.f32 %v832_v11, %v1744_v0 }
 0x187   : > { %v590_v13 = vpop.f32.mrf.mxu0  ;;  %v834_v15 = vpop.f32.mrf.mxu1 }
 0x188   : > { %965 = vst [vmem:[%s1752_s27 + $0x138] sm:$0xff] %v589_v10  ;;  %v591_v14 = vadd.f32 %v590_v13, %v1746_v41  ;;  %967 = vst [vmem:[%s1752_s27 + $0x148] sm:$0xff] %v833_v12 }
 0x189   : > { %v594_v16 = vpop.f32.mrf.mxu0  ;;  %v837_v18 = vpop.f32.mrf.mxu1 }
 0x18a   : > { %966 = vst [vmem:[%s1752_s27 + $0x140] sm:$0xff] %v591_v14  ;;  %v595_v17 = vadd.f32 %v594_v16, %v1742_v40  ;;  %v838_v19 = vadd.f32 %v837_v18, %v1744_v0 }
 0x18b   : > { %v596_v20 = vpop.f32.mrf.mxu0  ;;  %v839_v22 = vpop.f32.mrf.mxu1 }
 0x18c   : > { %968 = vst [vmem:[%s1752_s27 + $0x150] sm:$0xff] %v595_v17  ;;  %v597_v21 = vadd.f32 %v596_v20, %v1746_v41  ;;  %970 = vst [vmem:[%s1752_s27 + $0x160] sm:$0xff] %v838_v19 }
 0x18d   : > { %v600_v23 = vpop.f32.mrf.mxu0  ;;  %v842_v25 = vpop.f32.mrf.mxu1 }
 0x18e   : > { %969 = vst [vmem:[%s1752_s27 + $0x158] sm:$0xff] %v597_v21  ;;  %v601_v24 = vadd.f32 %v600_v23, %v1742_v40  ;;  %v843_v26 = vadd.f32 %v842_v25, %v1744_v0 }
 0x18f   : > { %v602_v27 = vpop.f32.mrf.mxu0  ;;  %v844_v29 = vpop.f32.mrf.mxu1 }
 0x190   : > { %971 = vst [vmem:[%s1752_s27 + $0x168] sm:$0xff] %v601_v24  ;;  %v603_v28 = vadd.f32 %v602_v27, %v1746_v41  ;;  %973 = vst [vmem:[%s1752_s27 + $0x178] sm:$0xff] %v843_v26 }
 0x191   : > { %v606_v30 = vpop.f32.mrf.mxu0  ;;  %v847_v32 = vpop.f32.mrf.mxu1 }
 0x192   : > { %972 = vst [vmem:[%s1752_s27 + $0x170] sm:$0xff] %v603_v28  ;;  %v607_v31 = vadd.f32 %v606_v30, %v1742_v40  ;;  %v848_v33 = vadd.f32 %v847_v32, %v1744_v0 }
 0x193   : > { %v608_v34 = vpop.f32.mrf.mxu0  ;;  %v849_v36 = vpop.f32.mrf.mxu1 }
 0x194   : > { %974 = vst [vmem:[%s1752_s27 + $0x180] sm:$0xff] %v607_v31  ;;  %v609_v35 = vadd.f32 %v608_v34, %v1746_v41  ;;  %976 = vst [vmem:[%s1752_s27 + $0x190] sm:$0xff] %v848_v33 }
 0x195   : > { %v612_v37 = vpop.f32.mrf.mxu0  ;;  %v852_v39 = vpop.f32.mrf.mxu1 }
 0x196   : > { %975 = vst [vmem:[%s1752_s27 + $0x188] sm:$0xff] %v609_v35  ;;  %v613_v38 = vadd.f32 %v612_v37, %v1742_v40  ;;  %v853_v42 = vadd.f32 %v852_v39, %v1744_v0 }
 0x197   : > { %v614_v43 = vpop.f32.mrf.mxu0  ;;  %v854_v45 = vpop.f32.mrf.mxu1 }
 0x198   : > { %977 = vst [vmem:[%s1752_s27 + $0x198] sm:$0xff] %v613_v38  ;;  %v615_v44 = vadd.f32 %v614_v43, %v1746_v41  ;;  %979 = vst [vmem:[%s1752_s27 + $0x1a8] sm:$0xff] %v853_v42 }
 0x199   : > { %v618_v46 = vpop.f32.mrf.mxu0  ;;  %v857_v48 = vpop.f32.mrf.mxu1 }
 0x19a   : > { %978 = vst [vmem:[%s1752_s27 + $0x1a0] sm:$0xff] %v615_v44  ;;  %v619_v47 = vadd.f32 %v618_v46, %v1742_v40  ;;  %v858_v49 = vadd.f32 %v857_v48, %v1744_v0 }
 0x19b   : > { %v620_v50 = vpop.f32.mrf.mxu0  ;;  %v859_v52 = vpop.f32.mrf.mxu1 }
 0x19c   : > { %980 = vst [vmem:[%s1752_s27 + $0x1b0] sm:$0xff] %v619_v47  ;;  %v621_v51 = vadd.f32 %v620_v50, %v1746_v41  ;;  %982 = vst [vmem:[%s1752_s27 + $0x1c0] sm:$0xff] %v858_v49 }
 0x19d   : > { %v624_v53 = vpop.f32.mrf.mxu0  ;;  %v862_v55 = vpop.f32.mrf.mxu1 }
 0x19e   : > { %981 = vst [vmem:[%s1752_s27 + $0x1b8] sm:$0xff] %v621_v51  ;;  %v625_v54 = vadd.f32 %v624_v53, %v1742_v40  ;;  %v863_v56 = vadd.f32 %v862_v55, %v1744_v0 }
 0x19f   : > { %v626_v57 = vpop.f32.mrf.mxu0  ;;  %v864_v59 = vpop.f32.mrf.mxu1 }
 0x1a0   : > { %983 = vst [vmem:[%s1752_s27 + $0x1c8] sm:$0xff] %v625_v54  ;;  %v627_v58 = vadd.f32 %v626_v57, %v1746_v41  ;;  %985 = vst [vmem:[%s1752_s27 + $0x1d8] sm:$0xff] %v863_v56 }
 0x1a1   : > { %v630_v60 = vpop.f32.mrf.mxu0  ;;  %v867_v62 = vpop.f32.mrf.mxu1 }
 0x1a2   : > { %984 = vst [vmem:[%s1752_s27 + $0x1d0] sm:$0xff] %v627_v58  ;;  %v631_v61 = vadd.f32 %v630_v60, %v1742_v40  ;;  %v868_v63 = vadd.f32 %v867_v62, %v1744_v0 }
 0x1a3   : > { %v632_v1 = vpop.f32.mrf.mxu0  ;;  %v869_v3 = vpop.f32.mrf.mxu1 }
 0x1a4   : > { %986 = vst [vmem:[%s1752_s27 + $0x1e0] sm:$0xff] %v631_v61  ;;  %v633_v2 = vadd.f32 %v632_v1, %v1746_v41  ;;  %988 = vst [vmem:[%s1752_s27 + $0x1f0] sm:$0xff] %v868_v63 }
 0x1a5   : > { %v636_v4 = vpop.f32.mrf.mxu0  ;;  %v872_v6 = vpop.f32.mrf.mxu1 }
 0x1a6   : > { %987 = vst [vmem:[%s1752_s27 + $0x1e8] sm:$0xff] %v633_v2  ;;  %v637_v5 = vadd.f32 %v636_v4, %v1742_v40  ;;  %v873_v7 = vadd.f32 %v872_v6, %v1744_v0 }
 0x1a7   : > { %v638_v8 = vpop.f32.mrf.mxu0  ;;  %v874_v10 = vpop.f32.mrf.mxu1 }
 0x1a8   : > { %989 = vst [vmem:[%s1752_s27 + $0x1f8] sm:$0xff] %v637_v5  ;;  %v639_v9 = vadd.f32 %v638_v8, %v1746_v41  ;;  %991 = vst [vmem:[%s1752_s27 + $0x208] sm:$0xff] %v873_v7 }
 0x1a9   : > { %v642_v11 = vpop.f32.mrf.mxu0  ;;  %v877_v13 = vpop.f32.mrf.mxu1 }
 0x1aa   : > { %990 = vst [vmem:[%s1752_s27 + $0x200] sm:$0xff] %v639_v9  ;;  %v643_v12 = vadd.f32 %v642_v11, %v1742_v40  ;;  %v878_v14 = vadd.f32 %v877_v13, %v1744_v0 }
 0x1ab   : > { %v644_v15 = vpop.f32.mrf.mxu0  ;;  %v879_v17 = vpop.f32.mrf.mxu1 }
 0x1ac   : > { %992 = vst [vmem:[%s1752_s27 + $0x210] sm:$0xff] %v643_v12  ;;  %v645_v16 = vadd.f32 %v644_v15, %v1746_v41  ;;  %994 = vst [vmem:[%s1752_s27 + $0x220] sm:$0xff] %v878_v14 }
 0x1ad   : > { %v648_v18 = vpop.f32.mrf.mxu0  ;;  %v882_v20 = vpop.f32.mrf.mxu1 }
 0x1ae   : > { %993 = vst [vmem:[%s1752_s27 + $0x218] sm:$0xff] %v645_v16  ;;  %v649_v19 = vadd.f32 %v648_v18, %v1742_v40  ;;  %v883_v21 = vadd.f32 %v882_v20, %v1744_v0 }
 0x1af   : > { %v650_v22 = vpop.f32.mrf.mxu0  ;;  %v884_v24 = vpop.f32.mrf.mxu1 }
 0x1b0   : > { %995 = vst [vmem:[%s1752_s27 + $0x228] sm:$0xff] %v649_v19  ;;  %v651_v23 = vadd.f32 %v650_v22, %v1746_v41  ;;  %997 = vst [vmem:[%s1752_s27 + $0x238] sm:$0xff] %v883_v21 }
 0x1b1   : > { %v654_v25 = vpop.f32.mrf.mxu0  ;;  %v887_v27 = vpop.f32.mrf.mxu1 }
 0x1b2   : > { %996 = vst [vmem:[%s1752_s27 + $0x230] sm:$0xff] %v651_v23  ;;  %v655_v26 = vadd.f32 %v654_v25, %v1742_v40  ;;  %v888_v28 = vadd.f32 %v887_v27, %v1744_v0 }
 0x1b3   : > { %v656_v29 = vpop.f32.mrf.mxu0  ;;  %v889_v31 = vpop.f32.mrf.mxu1 }
 0x1b4   : > { %998 = vst [vmem:[%s1752_s27 + $0x240] sm:$0xff] %v655_v26  ;;  %v657_v30 = vadd.f32 %v656_v29, %v1746_v41  ;;  %1000 = vst [vmem:[%s1752_s27 + $0x250] sm:$0xff] %v888_v28 }
 0x1b5   : > { %v660_v32 = vpop.f32.mrf.mxu0  ;;  %v892_v34 = vpop.f32.mrf.mxu1 }
 0x1b6   : > { %999 = vst [vmem:[%s1752_s27 + $0x248] sm:$0xff] %v657_v30  ;;  %v661_v33 = vadd.f32 %v660_v32, %v1742_v40  ;;  %v893_v35 = vadd.f32 %v892_v34, %v1744_v0 }
 0x1b7   : > { %v662_v36 = vpop.f32.mrf.mxu0  ;;  %v894_v38 = vpop.f32.mrf.mxu1 }
 0x1b8   : > { %1001 = vst [vmem:[%s1752_s27 + $0x258] sm:$0xff] %v661_v33  ;;  %v663_v37 = vadd.f32 %v662_v36, %v1746_v41  ;;  %1003 = vst [vmem:[%s1752_s27 + $0x268] sm:$0xff] %v893_v35 }
 0x1b9   : > { %v666_v39 = vpop.f32.mrf.mxu0  ;;  %v897_v43 = vpop.f32.mrf.mxu1 }
 0x1ba   : > { %1002 = vst [vmem:[%s1752_s27 + $0x260] sm:$0xff] %v663_v37  ;;  %v667_v42 = vadd.f32 %v666_v39, %v1742_v40  ;;  %v898_v44 = vadd.f32 %v897_v43, %v1744_v0 }
 0x1bb   : > { %v668_v45 = vpop.f32.mrf.mxu0  ;;  %v899_v47 = vpop.f32.mrf.mxu1 }
 0x1bc   : > { %1004 = vst [vmem:[%s1752_s27 + $0x270] sm:$0xff] %v667_v42  ;;  %v669_v46 = vadd.f32 %v668_v45, %v1746_v41  ;;  %1006 = vst [vmem:[%s1752_s27 + $0x280] sm:$0xff] %v898_v44 }
 0x1bd   : > { %v672_v48 = vpop.f32.mrf.mxu0  ;;  %v902_v50 = vpop.f32.mrf.mxu1 }
 0x1be   : > { %1005 = vst [vmem:[%s1752_s27 + $0x278] sm:$0xff] %v669_v46  ;;  %v673_v49 = vadd.f32 %v672_v48, %v1742_v40  ;;  %v903_v51 = vadd.f32 %v902_v50, %v1744_v0 }
 0x1bf   : > { %v674_v52 = vpop.f32.mrf.mxu0  ;;  %v904_v54 = vpop.f32.mrf.mxu1 }
 0x1c0   : > { %1007 = vst [vmem:[%s1752_s27 + $0x288] sm:$0xff] %v673_v49  ;;  %v675_v53 = vadd.f32 %v674_v52, %v1746_v41  ;;  %1009 = vst [vmem:[%s1752_s27 + $0x298] sm:$0xff] %v903_v51 }
 0x1c1   : > { %v678_v55 = vpop.f32.mrf.mxu0  ;;  %v907_v57 = vpop.f32.mrf.mxu1 }
 0x1c2   : > { %1008 = vst [vmem:[%s1752_s27 + $0x290] sm:$0xff] %v675_v53  ;;  %v679_v56 = vadd.f32 %v678_v55, %v1742_v40  ;;  %v908_v58 = vadd.f32 %v907_v57, %v1744_v0 }
 0x1c3   : > { %v680_v59 = vpop.f32.mrf.mxu0  ;;  %v909_v61 = vpop.f32.mrf.mxu1 }
 0x1c4   : > { %1010 = vst [vmem:[%s1752_s27 + $0x2a0] sm:$0xff] %v679_v56  ;;  %v681_v60 = vadd.f32 %v680_v59, %v1746_v41  ;;  %1012 = vst [vmem:[%s1752_s27 + $0x2b0] sm:$0xff] %v908_v58 }
 0x1c5   : > { %v684_v62 = vpop.f32.mrf.mxu0  ;;  %v912_v1 = vpop.f32.mrf.mxu1 }
 0x1c6   : > { %1011 = vst [vmem:[%s1752_s27 + $0x2a8] sm:$0xff] %v681_v60  ;;  %v685_v63 = vadd.f32 %v684_v62, %v1742_v40  ;;  %v913_v2 = vadd.f32 %v912_v1, %v1744_v0 }
 0x1c7   : > { %v686_v3 = vpop.f32.mrf.mxu0  ;;  %v914_v5 = vpop.f32.mrf.mxu1 }
 0x1c8   : > { %1013 = vst [vmem:[%s1752_s27 + $0x2b8] sm:$0xff] %v685_v63  ;;  %v687_v4 = vadd.f32 %v686_v3, %v1746_v41  ;;  %1015 = vst [vmem:[%s1752_s27 + $0x2c8] sm:$0xff] %v913_v2 }
 0x1c9   : > { %v690_v6 = vpop.f32.mrf.mxu0  ;;  %v917_v8 = vpop.f32.mrf.mxu1 }
 0x1ca   : > { %1014 = vst [vmem:[%s1752_s27 + $0x2c0] sm:$0xff] %v687_v4  ;;  %v691_v7 = vadd.f32 %v690_v6, %v1742_v40  ;;  %v918_v9 = vadd.f32 %v917_v8, %v1744_v0 }
 0x1cb   : > { %v692_v10 = vpop.f32.mrf.mxu0  ;;  %v919_v12 = vpop.f32.mrf.mxu1 }
 0x1cc   : > { %1016 = vst [vmem:[%s1752_s27 + $0x2d0] sm:$0xff] %v691_v7  ;;  %v693_v11 = vadd.f32 %v692_v10, %v1746_v41  ;;  %1018 = vst [vmem:[%s1752_s27 + $0x2e0] sm:$0xff] %v918_v9 }
 0x1cd   : > { %v696_v13 = vpop.f32.mrf.mxu0  ;;  %v922_v15 = vpop.f32.mrf.mxu1 }
 0x1ce   : > { %1017 = vst [vmem:[%s1752_s27 + $0x2d8] sm:$0xff] %v693_v11  ;;  %v697_v14 = vadd.f32 %v696_v13, %v1742_v40  ;;  %v923_v16 = vadd.f32 %v922_v15, %v1744_v0 }
 0x1cf   : > { %v698_v17 = vpop.f32.mrf.mxu0  ;;  %v924_v19 = vpop.f32.mrf.mxu1 }
 0x1d0   : > { %1019 = vst [vmem:[%s1752_s27 + $0x2e8] sm:$0xff] %v697_v14  ;;  %v699_v18 = vadd.f32 %v698_v17, %v1746_v41  ;;  %1021 = vst [vmem:[%s1752_s27 + $0x2f8] sm:$0xff] %v923_v16 }
 0x1d2   : > { %1020 = vst [vmem:[%s1752_s27 + $0x2f0] sm:$0xff] %v699_v18 }
 0x1d3   : > { %1358 = shalt.err (!%p1355_p6)
}
 0x1d4   : > { %s1359_s30 = scalar_lea.hbm %s1944_s6, 12288  ;;  %s1363_s5 = scalar_lea.hbm %s2002_s3, 24576 }
 0x1d5   : > { %p1360_p8 = scmp.ne.s32.totalorder %s1944_s6, %s1359_s30  ;;  %p1364_p11 = scmp.lt.s32.totalorder %s1944_s6, %s2002_s3 }
 0x1d6   : > { %p1365_p12 = scmp.lt.s32.totalorder %s1363_s5, %s1359_s30 }
 0x1d7   : > { %p1361_p5 = pnand %p1360_p8, %p2015_p10 }
 0x1d8   : > { %p1366_p13 = por %p1365_p12, %p1364_p11 }
 0x1d9   : > { %p1362_p9 = pneg %p1361_p5 }
 0x1db   : > { %p1367_p7 = pnand %p1366_p13, %p1362_p9 }
 0x1dd   : > { %1370 = shalt.err (!%p1367_p7)
}
 0x1de   : > { %s1441_s27 = smov 384   ;;  %s1442_s10 = smov 768  }
 0x1df   : > { %s1443_s15 = smov 24  }
 0x1e0   : > { %1184 = dma.vmem_to_hbm [thread:$0]  (%p2015_p10), %s1947_s19, 12288, %s1944_s6, %s1023_s4, %s1441_s27, %s1442_s10, %s1443_s15  }
 0x1e1 PF: > { %s1054_s28 = sand.u32 1, %s1409_s12   ;;  %p2016_p2 = scmp.ne.s32.totalorder %s2009_s26, 0 }
 0x1e2   : > { %p2017_p1 = scmp.ge.s32.totalorder %s1429_s17, 2  ;;  %s1055_s8 = scalar_lea.sflag [#allocation4], %s1054_s28 }
 0x1e4   : > { %p1198_p0 = pnand %p2017_p1, %p2016_p2 }
 0x1e6   : > { %p1199_p3 = pneg %p1198_p0 }
 0x1e8   : > { %1404 = dma.done.wait (%p1199_p3), %s1055_s8, 12288  }
 0x1e9   : > { %1406 = vsyncadd (%p1199_p3), %s1055_s8, 4294955008  ;;  %s20_s17 = sadd.s32 1, %s1429_s17   ;;  %s2018_s12 = smov %s1413_s13 }
 0x1ea   : > { %p17_p4 = scmp.ge.s32.totalorder %s20_s17, 4   ;;  %s2019_s13 = smov %s1417_s14 }
 0x1eb   : > { %s2020_s14 = smov %s1512_s24  ;;  %s2021_s15 = smov %s1425_s16 }
 0x1ec   : > { %s2022_s16 = smov %s2024_s18  ;;  %19 = sbr.rel (!%p17_p4) target bundleno = 7 (0x7), region = 94 }
 0x1f1   :  { %1060 = vsyncpa [#allocation3], 1 }
 0x1f2   :  { %1062 = vsyncpa [#allocation3 + $0x1], 1 }
 0x1f3   :  { %1063 = vsyncpa [#allocation6], 1 }
 0x1f4   :  { %1065 = vsyncpa [#allocation6 + $0x1], 1 }
 0x1f5   :  { %1066 = vsyncpa [#allocation4], 1 }
 0x1f6   :  { %1068 = vsyncpa [#allocation4 + $0x1], 1 }

</bundles_post_ra>
